<compile_context>
chip_gen: v7x
topology: tpu7x:2x2x1
jax: 0.10.0
libtpu: 0.0.40
codegen_flags: <defaults>
</compile_context>

<pallas_src>
import jax
import jax.numpy as jnp
from jax.experimental import pallas as pl
from jax.experimental.pallas import tpu as pltpu

IN_F = 784      # logical input features
HID = 256       # hidden features
OUT_F = 10      # logical output features
K_PAD = 896     # 784 padded up to a multiple of 128
OUT_PAD = 128   # lane-dense padded output width


def _round_up(n, m):
    return (n + m - 1) // m * m


def mlp_kernel(x_ref, w1_ref, b1_ref, w2_ref, b2_ref, out_ref):
    # hidden layer: (TB, 896)bf16 @ (896, 256)bf16 -> f32 acc; bias + ReLU in f32
    h = jnp.dot(x_ref[...], w1_ref[...], preferred_element_type=jnp.float32)
    h = jnp.maximum(h + b1_ref[...], 0.0)
    # output layer: (TB, 256)bf16 @ (256, 128)bf16 -> f32 acc; bias in f32
    o = jnp.dot(h.astype(jnp.bfloat16), w2_ref[...],
                preferred_element_type=jnp.float32)
    out_ref[...] = (o + b2_ref[...]).astype(out_ref.dtype)


def mlp_forward(x, w1, b1, w2, b2):
    """x: (B, 784); w1: (784, 256); b1: (256,); w2: (256, 10); b2: (10,)."""
    B = x.shape[0]

    # Tile the batch: TB a multiple of 256 (fills the MXU M dim), capped at 512
    # so double-buffered bf16 x tiles + resident weights + the f32 h intermediate
    # stay far below v5e's 16 MiB default scoped VMEM and v7x's 64 MiB physical.
    TB = min(512, _round_up(B, 256))
    B_pad = _round_up(B, TB)
    grid = (B_pad // TB,)

    # --- wrapper-side padding / casting (layout plumbing, not compute) -------
    x_p = jnp.pad(x, ((0, B_pad - B), (0, K_PAD - IN_F))).astype(jnp.bfloat16)
    w1_p = jnp.pad(w1, ((0, K_PAD - IN_F), (0, 0))).astype(jnp.bfloat16)
    b1_p = b1.reshape(1, HID).astype(jnp.float32)
    w2_p = jnp.pad(w2, ((0, 0), (0, OUT_PAD - OUT_F))).astype(jnp.bfloat16)
    b2_p = jnp.pad(b2, (0, OUT_PAD - OUT_F)).reshape(1, OUT_PAD).astype(jnp.float32)

    flops = 2 * B_pad * K_PAD * HID + 2 * B_pad * HID * OUT_PAD
    bytes_accessed = (x_p.size * 2 + w1_p.size * 2 + w2_p.size * 2
                      + b1_p.size * 4 + b2_p.size * 4 + B_pad * OUT_PAD * 4)

    out_padded = pl.pallas_call(
        mlp_kernel,
        out_shape=jax.ShapeDtypeStruct((B_pad, OUT_PAD), jnp.float32),
        grid=grid,
        in_specs=[
            pl.BlockSpec((TB, K_PAD), lambda i: (i, 0)),      # x tile (streamed)
            pl.BlockSpec((K_PAD, HID), lambda i: (0, 0)),     # w1 (VMEM-resident)
            pl.BlockSpec((1, HID), lambda i: (0, 0)),         # b1 (VMEM-resident)
            pl.BlockSpec((HID, OUT_PAD), lambda i: (0, 0)),   # w2 (VMEM-resident)
            pl.BlockSpec((1, OUT_PAD), lambda i: (0, 0)),     # b2 (VMEM-resident)
        ],
        out_specs=pl.BlockSpec((TB, OUT_PAD), lambda i: (i, 0)),
        compiler_params=pltpu.CompilerParams(
            dimension_semantics=("parallel",),
            vmem_limit_bytes=32 * 1024 * 1024,
        ),
        cost_estimate=pl.CostEstimate(
            flops=flops, transcendentals=0, bytes_accessed=bytes_accessed),
    )(x_p, w1_p, b1_p, w2_p, b2_p)

    # strip batch padding and the lane-padding columns
    return out_padded[:B, :OUT_F]


def init_params(key):
    """Deterministic init mimicking torch.nn.Linear defaults (uniform +-1/sqrt(fan_in))."""
    k1, k2, k3, k4 = jax.random.split(key, 4)
    lim1 = 1.0 / jnp.sqrt(784.0)
    lim2 = 1.0 / jnp.sqrt(256.0)
    # stored already transposed: (in_features, out_features)
    w1 = jax.random.uniform(k1, (784, 256), jnp.float32, -lim1, lim1)
    b1 = jax.random.uniform(k2, (256,), jnp.float32, -lim1, lim1)
    w2 = jax.random.uniform(k3, (256, 10), jnp.float32, -lim2, lim2)
    b2 = jax.random.uniform(k4, (10,), jnp.float32, -lim2, lim2)
    return w1, b1, w2, b2


if __name__ == "__main__":
    key = jax.random.PRNGKey(0)
    kx, kp = jax.random.split(key)
    B = 2
    x = jax.random.normal(kx, (B, 784), jnp.float32)
    w1, b1, w2, b2 = init_params(kp)

    out = mlp_forward(x, w1, b1, w2, b2)
    out = jax.block_until_ready(out)

    # reference check in plain JAX (f32); bf16 matmul inputs with f32
    # accumulation -> loosened tolerance vs the pure-f32 reference.
    ref = jnp.maximum(x @ w1 + b1, 0.0) @ w2 + b2
    assert out.shape == (B, 10)
    assert jnp.allclose(out, ref, atol=2e-2, rtol=2e-2)
    print("KERNEL_OK")
</pallas_src>

<mosaic_0001>
module attributes {stable_mosaic.version = 11 : i64} {
  func.func @mlp_kernel(%arg0: i32, %arg1: memref<256x896xbf16, #tpu.memory_space<vmem>>, %arg2: memref<896x256xbf16, #tpu.memory_space<vmem>>, %arg3: memref<1x256xf32, #tpu.memory_space<vmem>>, %arg4: memref<256x128xbf16, #tpu.memory_space<vmem>>, %arg5: memref<1x128xf32, #tpu.memory_space<vmem>>, %arg6: memref<256x128xf32, #tpu.memory_space<vmem>>) attributes {dimension_semantics = [#tpu.dimension_semantics<parallel>], iteration_bounds = array<i64: 1>, scalar_prefetch = 0 : i64, scratch_operands = 0 : i64, tpu.core_type = #tpu.core_type<tc>, window_params = [{transform_indices = @transform_0, window_bounds = array<i64: 256, 896>}, {pipeline_mode = #tpu.pipeline_mode<synchronous>, transform_indices = @transform_1, window_bounds = array<i64: 896, 256>}, {pipeline_mode = #tpu.pipeline_mode<synchronous>, transform_indices = @transform_2, window_bounds = array<i64: 1, 256>}, {pipeline_mode = #tpu.pipeline_mode<synchronous>, transform_indices = @transform_3, window_bounds = array<i64: 256, 128>}, {pipeline_mode = #tpu.pipeline_mode<synchronous>, transform_indices = @transform_4, window_bounds = array<i64: 1, 128>}, {transform_indices = @transform_5, window_bounds = array<i64: 256, 128>}]} {
    %c0 = arith.constant 0 : index
    %c0_0 = arith.constant 0 : index
    %0 = vector.load %arg1[%c0, %c0_0] : memref<256x896xbf16, #tpu.memory_space<vmem>>, vector<256x896xbf16>
    %c0_1 = arith.constant 0 : index
    %c0_2 = arith.constant 0 : index
    %1 = vector.load %arg2[%c0_1, %c0_2] : memref<896x256xbf16, #tpu.memory_space<vmem>>, vector<896x256xbf16>
    %cst = arith.constant dense<0.000000e+00> : vector<256x256xf32>
    %2 = tpu.matmul %0, %1, %cst {dimension_numbers = #tpu.dot_dimension_numbers<[1], [0], [0], [1], [0, 0, 1, 1], [], []>} : vector<256x896xbf16>, vector<896x256xbf16>, vector<256x256xf32> -> vector<256x256xf32>
    %c0_3 = arith.constant 0 : index
    %c0_4 = arith.constant 0 : index
    %3 = vector.load %arg3[%c0_3, %c0_4] : memref<1x256xf32, #tpu.memory_space<vmem>>, vector<1x256xf32>
    %4 = vector.broadcast %3 : vector<1x256xf32> to vector<256x256xf32>
    %5 = arith.addf %2, %4 : vector<256x256xf32>
    %cst_5 = arith.constant 0.000000e+00 : f32
    %6 = vector.broadcast %cst_5 : f32 to vector<256x256xf32>
    %7 = arith.maximumf %5, %6 : vector<256x256xf32>
    %8 = arith.truncf %7 : vector<256x256xf32> to vector<256x256xbf16>
    %c0_6 = arith.constant 0 : index
    %c0_7 = arith.constant 0 : index
    %9 = vector.load %arg4[%c0_6, %c0_7] : memref<256x128xbf16, #tpu.memory_space<vmem>>, vector<256x128xbf16>
    %cst_8 = arith.constant dense<0.000000e+00> : vector<256x128xf32>
    %10 = tpu.matmul %8, %9, %cst_8 {dimension_numbers = #tpu.dot_dimension_numbers<[1], [0], [0], [1], [0, 0, 1, 1], [], []>} : vector<256x256xbf16>, vector<256x128xbf16>, vector<256x128xf32> -> vector<256x128xf32>
    %c0_9 = arith.constant 0 : index
    %c0_10 = arith.constant 0 : index
    %11 = vector.load %arg5[%c0_9, %c0_10] : memref<1x128xf32, #tpu.memory_space<vmem>>, vector<1x128xf32>
    %12 = vector.broadcast %11 : vector<1x128xf32> to vector<256x128xf32>
    %13 = arith.addf %10, %12 : vector<256x128xf32>
    %c0_11 = arith.constant 0 : index
    %c0_12 = arith.constant 0 : index
    %14 = vector.load %arg6[%c0_11, %c0_12] : memref<256x128xf32, #tpu.memory_space<vmem>>, vector<256x128xf32>
    tpu.vector_store %arg6[%c0_11, %c0_12], %13 {strides = array<i32>} : memref<256x128xf32, #tpu.memory_space<vmem>>, vector<256x128xf32>,
    return
  }
  func.func @transform_0(%arg0: i32) -> (i32, i32) {
    %c0_i32 = arith.constant 0 : i32
    %c0_i32_0 = arith.constant 0 : i32
    return %arg0, %c0_i32 : i32, i32
  }
  func.func @transform_1(%arg0: i32) -> (i32, i32) {
    %c0_i32 = arith.constant 0 : i32
    %c0_i32_0 = arith.constant 0 : i32
    %c0_i32_1 = arith.constant 0 : i32
    return %c0_i32, %c0_i32_0 : i32, i32
  }
  func.func @transform_2(%arg0: i32) -> (i32, i32) {
    %c0_i32 = arith.constant 0 : i32
    %c0_i32_0 = arith.constant 0 : i32
    %c0_i32_1 = arith.constant 0 : i32
    return %c0_i32, %c0_i32_0 : i32, i32
  }
  func.func @transform_3(%arg0: i32) -> (i32, i32) {
    %c0_i32 = arith.constant 0 : i32
    %c0_i32_0 = arith.constant 0 : i32
    %c0_i32_1 = arith.constant 0 : i32
    return %c0_i32, %c0_i32_0 : i32, i32
  }
  func.func @transform_4(%arg0: i32) -> (i32, i32) {
    %c0_i32 = arith.constant 0 : i32
    %c0_i32_0 = arith.constant 0 : i32
    %c0_i32_1 = arith.constant 0 : i32
    return %c0_i32, %c0_i32_0 : i32, i32
  }
  func.func @transform_5(%arg0: i32) -> (i32, i32) {
    %c0_i32 = arith.constant 0 : i32
    %c0_i32_0 = arith.constant 0 : i32
    return %arg0, %c0_i32 : i32, i32
  }
}

</mosaic_0001>

<bundles_post_ra>
// kernel: tpu_custom_call.1
= control target key start
LH: loop header
LB: loop body
LE: loop exit
PB: predicated region body
PF: predicated region fallthrough
CT: control target
= control target key end

     0   :  { %10 = vsyncpa [#allocation3], 0  ;;  %s4294_s0 = inlined_call_operand.hbm [shape: bf16[256,896], index: 0, kind: input, shape index: {}]   ;;  %s4295_s1 = inlined_call_operand.hbm [shape: bf16[896,256], index: 1, kind: input, shape index: {}]   ;;  %s4296_s2 = inlined_call_operand.vmem [shape: f32[1,256], index: 2, kind: input, shape index: {}]   ;;  %s4297_s3 = inlined_call_operand.hbm [shape: bf16[256,128], index: 3, kind: input, shape index: {}]   ;;  %s4298_s4 = inlined_call_operand.vmem [shape: f32[1,128], index: 4, kind: input, shape index: {}]   ;;  %s4299_s5 = inlined_call_operand.hbm [shape: f32[256,128], index: 5, kind: output, shape index: {}]  }
   0x1   :  { %11 = vsyncpa [#allocation6], 0 }
   0x2   :  { %12 = vsyncpa [#allocation4], 0  ;;  %s3755_s18 = smov [#allocation5]   ;;  %s3661_s22 = scalar_lea.hbm %s4295_s1, 14336 }
   0x3   :  { %s30_s19 = sshll.u32 %s3755_s18, 4  ;;  %p3662_p0 = scmp.ne.s32.totalorder %s4295_s1, %s3661_s22  ;;  %s31_s19 = int_to_ptr.vmem [resolvable:$true] %s30_s19 }
   0x4   :  { %p3665_p1 = scmp.lt.u32.totalorder %s3661_s22, %s4295_s1 }
   0x6   :  { %p3667_p2 = pnand %p3665_p1, %p3662_p0 }
   0x8   :  { %3670 = shalt.err (!%p3667_p2)
}
   0x9   :  { %s3671_s27 = scalar_lea.vmem %s31_s19, 14336  ;;  %p3676_p4 = scmp.lt.s32.totalorder %s31_s19, %s31_s19 }
   0xa   :  { %p3672_p3 = scmp.ne.s32.totalorder %s31_s19, %s3671_s27  ;;  %p3677_p5 = scmp.lt.s32.totalorder %s3671_s27, %s3671_s27 }
   0xc   :  { %p3678_p6 = por %p3677_p5, %p3676_p4 }
   0xe   :  { %p3679_p7 = pnand %p3678_p6, %p3672_p3 }
  0x10   :  { %3682 = shalt.err (!%p3679_p7)
}
  0x11   :  { %s3756_s28 = smov 128   ;;  %s3757_s29 = smov 8  }
  0x12   :  { %36 = dma.hbm_to_vmem [thread:$0]  %s4295_s1, 14336, %s31_s19, [#allocation6], %s3756_s28, %s3756_s28, %s3757_s29  }
  0x13   :  { %s3758_s7 = smov [#allocation2]   ;;  %s3683_s11 = scalar_lea.hbm %s4294_s0, 14336 }
  0x14   :  { %s18_s8 = sshll.u32 %s3758_s7, 4  ;;  %p3684_p8 = scmp.ne.s32.totalorder %s4294_s0, %s3683_s11  ;;  %s19_s8 = int_to_ptr.vmem [resolvable:$true] %s18_s8 }
  0x15   :  { %p3687_p9 = scmp.lt.u32.totalorder %s3683_s11, %s4294_s0 }
  0x17   :  { %p3689_p10 = pnand %p3687_p9, %p3684_p8 }
  0x19   :  { %3692 = shalt.err (!%p3689_p10)
}
  0x1a   :  { %s3693_s16 = scalar_lea.vmem %s19_s8, 14336  ;;  %p3698_p12 = scmp.lt.s32.totalorder %s19_s8, %s19_s8 }
  0x1b   :  { %p3694_p11 = scmp.ne.s32.totalorder %s19_s8, %s3693_s16  ;;  %p3699_p13 = scmp.lt.s32.totalorder %s3693_s16, %s3693_s16 }
  0x1d   :  { %p3700_p0 = por %p3699_p13, %p3698_p12 }
  0x1f   :  { %p3701_p1 = pnand %p3700_p0, %p3694_p11 }
  0x21   :  { %3704 = shalt.err (!%p3701_p1)
}
  0x22   :  { %s3759_s1 = smov 448   ;;  %s3760_s17 = smov 28  }
  0x23   :  { %24 = dma.hbm_to_vmem [thread:$0]  %s4294_s0, 14336, %s19_s8, [#allocation3], %s3759_s1, %s3759_s1, %s3760_s17  }
  0x24   :  { %s3761_s20 = smov [#allocation7]   ;;  %s3705_s24 = scalar_lea.hbm %s4297_s3, 2048 }
  0x25   :  { %s44_s21 = sshll.u32 %s3761_s20, 4  ;;  %p3706_p2 = scmp.ne.s32.totalorder %s4297_s3, %s3705_s24  ;;  %s45_s21 = int_to_ptr.vmem [resolvable:$true] %s44_s21 }
  0x26   :  { %p3709_p3 = scmp.lt.u32.totalorder %s3705_s24, %s4297_s3 }
  0x28   :  { %p3711_p4 = pnand %p3709_p3, %p3706_p2 }
  0x2a   :  { %3714 = shalt.err (!%p3711_p4)
}
  0x2b   :  { %s3715_s6 = scalar_lea.vmem %s45_s21, 2048  ;;  %p3720_p6 = scmp.lt.s32.totalorder %s45_s21, %s45_s21 }
  0x2c   :  { %p3716_p5 = scmp.ne.s32.totalorder %s45_s21, %s3715_s6  ;;  %p3721_p7 = scmp.lt.s32.totalorder %s3715_s6, %s3715_s6 }
  0x2e   :  { %p3722_p8 = por %p3721_p7, %p3720_p6 }
  0x30   :  { %p3723_p9 = pnand %p3722_p8, %p3716_p5 }
  0x32   :  { %3726 = shalt.err (!%p3723_p9)
}
  0x33   :  { %s3762_s0 = smov 64   ;;  %s3763_s7 = smov 4  }
  0x34   :  { %50 = dma.hbm_to_vmem [thread:$0]  %s4297_s3, 2048, %s45_s21, [#allocation6], %s3762_s0, %s3762_s0, %s3763_s7  }
  0x35   :  { %3749 = dma.done.wait [#allocation3], 14336  }
  0x36   :  { %3750 = vsyncadd [#allocation3], 4294952960 }
  0x37   :  { %3751 = dma.done.wait [#allocation6], 16384  }
  0x38   :  { %3752 = vsyncadd [#allocation6], 4294950912  ;;  %v3835_v0 = vld [vmem:[#allocation5 + $0x104] ss:$8 sps:$4 sm:$0xff]   ;;  %v3837_v1 = vld [vmem:[#allocation5 + $0x100] ss:$8 sps:$4 sm:$0xff]  }
  0x39   :  { %1644 = vmatprep.subr.bf16.mxu0 %v3835_v0  ;;  %v3840_v2 = vld [vmem:[#allocation5 + $0x114] ss:$8 sps:$4 sm:$0xff]   ;;  %v3843_v3 = vld [vmem:[#allocation5 + $0x110] ss:$8 sps:$4 sm:$0xff]   ;;  %v3846_v4 = vld [vmem:[#allocation5 + $0x124] ss:$8 sps:$4 sm:$0xff]  }
  0x3a   :  { %1645 = vmatpush1.bf16.msra.mxu0 %v3837_v1  ;;  %v3849_v5 = vld [vmem:[#allocation5 + $0x120] ss:$8 sps:$4 sm:$0xff]   ;;  %v3852_v6 = vld [vmem:[#allocation5 + $0x134] ss:$8 sps:$4 sm:$0xff]   ;;  %v3855_v7 = vld [vmem:[#allocation5 + $0x130] ss:$8 sps:$4 sm:$0xff]  }
  0x3b   :  { %1646 = vmatprep.subr.bf16.mxu0 %v3840_v2  ;;  %v3858_v8 = vld [vmem:[#allocation5 + $0x144] ss:$8 sps:$4 sm:$0xff]   ;;  %v3861_v9 = vld [vmem:[#allocation5 + $0x140] ss:$8 sps:$4 sm:$0xff]   ;;  %v3864_v10 = vld [vmem:[#allocation5 + $0x154] ss:$8 sps:$4 sm:$0xff]  }
  0x3c   :  { %v3867_v11 = vld [vmem:[#allocation5 + $0x150] ss:$8 sps:$4 sm:$0xff]   ;;  %v3869_v12 = vld [vmem:[#allocation5 + $0x164] ss:$8 sps:$4 sm:$0xff]   ;;  %v3872_v14 = vld [vmem:[#allocation5 + $0x160] ss:$8 sps:$4 sm:$0xff]  }
  0x3d   :  { %v3362_v13 = vld [vmem:[#allocation5 + $0x4] ss:$8 sps:$4 sm:$0xff]   ;;  %v3366_v15 = vld [vmem:[#allocation5] ss:$8 sps:$4 sm:$0xff]   ;;  %v3875_v16 = vld [vmem:[#allocation5 + $0x174] ss:$8 sps:$4 sm:$0xff]  }
  0x3e   :  { %1647 = vmatpush1.bf16.msra.mxu0 %v3843_v3  ;;  %1451 = vmatprep.subr.bf16.mxu1 %v3362_v13  ;;  %v3370_v17 = vld [vmem:[#allocation2 + $0xc] ss:$28 sps:$4 sm:$0xff]   ;;  %v3371_v18 = vld [vmem:[#allocation5 + $0x14] ss:$8 sps:$4 sm:$0xff]   ;;  %v3878_v19 = vld [vmem:[#allocation5 + $0x170] ss:$8 sps:$4 sm:$0xff]  }
  0x3f   :  { %1648 = vmatprep.subr.bf16.mxu0 %v3846_v4  ;;  %1452 = vmatpush1.bf16.msra.mxu1 %v3366_v15  ;;  %v3376_v20 = vld [vmem:[#allocation5 + $0x10] ss:$8 sps:$4 sm:$0xff]   ;;  %v3377_v21 = vld [vmem:[#allocation5 + $0x24] ss:$8 sps:$4 sm:$0xff]   ;;  %v3382_v23 = vld [vmem:[#allocation5 + $0x20] ss:$8 sps:$4 sm:$0xff]  }
  0x40   :  { %1676 = vmatprep.mubr.bf16.mxu0 %v3370_v17  ;;  %1453 = vmatprep.subr.bf16.mxu1 %v3371_v18  ;;  %v3882_v22 = vld [vmem:[#allocation5 + $0x184] ss:$8 sps:$4 sm:$0xff]   ;;  %v3885_v24 = vld [vmem:[#allocation5 + $0x180] ss:$8 sps:$4 sm:$0xff]   ;;  %v3385_v25 = vld [vmem:[#allocation5 + $0x34] ss:$8 sps:$4 sm:$0xff]  }
  0x41   :  { %v3888_v26 = vld [vmem:[#allocation5 + $0x194] ss:$8 sps:$4 sm:$0xff]   ;;  %v3391_v27 = vld [vmem:[#allocation5 + $0x30] ss:$8 sps:$4 sm:$0xff]   ;;  %v3392_v28 = vld [vmem:[#allocation5 + $0x44] ss:$8 sps:$4 sm:$0xff]  }
  0x42   :  { %1649 = vmatpush1.bf16.msra.mxu0 %v3849_v5  ;;  %v3891_v29 = vld [vmem:[#allocation5 + $0x190] ss:$8 sps:$4 sm:$0xff]   ;;  %v3893_v30 = vld [vmem:[#allocation5 + $0x1a4] ss:$8 sps:$4 sm:$0xff]   ;;  %v3397_v31 = vld [vmem:[#allocation5 + $0x40] ss:$8 sps:$4 sm:$0xff]  }
  0x43   :  { %1650 = vmatprep.subr.bf16.mxu0 %v3852_v6  ;;  %1454 = vmatpush1.bf16.msra.mxu1 %v3376_v20  ;;  %v3400_v32 = vld [vmem:[#allocation5 + $0x54] ss:$8 sps:$4 sm:$0xff]   ;;  %v3897_v33 = vld [vmem:[#allocation5 + $0x1a0] ss:$8 sps:$4 sm:$0xff]   ;;  %v3406_v35 = vld [vmem:[#allocation5 + $0x50] ss:$8 sps:$4 sm:$0xff]  }
  0x44   :  { %1455 = vmatprep.subr.bf16.mxu1 %v3377_v21  ;;  %v3899_v34 = vld [vmem:[#allocation5 + $0x1b4] ss:$8 sps:$4 sm:$0xff]   ;;  %v3407_v36 = vld [vmem:[#allocation5 + $0x64] ss:$8 sps:$4 sm:$0xff]   ;;  %v3903_v37 = vld [vmem:[#allocation5 + $0x1b0] ss:$8 sps:$4 sm:$0xff]  }
  0x45   :  { %v3906_v38 = vld [vmem:[#allocation5 + $0x1c4] ss:$8 sps:$4 sm:$0xff]   ;;  %v3412_v39 = vld [vmem:[#allocation5 + $0x60] ss:$8 sps:$4 sm:$0xff]   ;;  %v3415_v40 = vld [vmem:[#allocation5 + $0x74] ss:$8 sps:$4 sm:$0xff]  }
  0x46   :  { %1651 = vmatpush1.bf16.msra.mxu0 %v3855_v7  ;;  %v3909_v41 = vld [vmem:[#allocation5 + $0x1c0] ss:$8 sps:$4 sm:$0xff]   ;;  %v3912_v42 = vld [vmem:[#allocation5 + $0x1d4] ss:$8 sps:$4 sm:$0xff]   ;;  %v3421_v43 = vld [vmem:[#allocation5 + $0x70] ss:$8 sps:$4 sm:$0xff]  }
  0x47   :  { %1652 = vmatprep.subr.bf16.mxu0 %v3858_v8  ;;  %1456 = vmatpush1.bf16.msra.mxu1 %v3382_v23  ;;  %v3422_v44 = vld [vmem:[#allocation5 + $0x84] ss:$8 sps:$4 sm:$0xff]   ;;  %v3915_v45 = vld [vmem:[#allocation5 + $0x1d0] ss:$8 sps:$4 sm:$0xff]   ;;  %v3427_v47 = vld [vmem:[#allocation5 + $0x80] ss:$8 sps:$4 sm:$0xff]  }
  0x48   :  { %1457 = vmatprep.subr.bf16.mxu1 %v3385_v25  ;;  %v3918_v46 = vld [vmem:[#allocation5 + $0x1e4] ss:$8 sps:$4 sm:$0xff]   ;;  %v3430_v48 = vld [vmem:[#allocation5 + $0x94] ss:$8 sps:$4 sm:$0xff]   ;;  %v3921_v49 = vld [vmem:[#allocation5 + $0x1e0] ss:$8 sps:$4 sm:$0xff]  }
  0x49   :  { %v3923_v50 = vld [vmem:[#allocation5 + $0x1f4] ss:$8 sps:$4 sm:$0xff]   ;;  %v3436_v51 = vld [vmem:[#allocation5 + $0x90] ss:$8 sps:$4 sm:$0xff]   ;;  %v3437_v52 = vld [vmem:[#allocation5 + $0xa4] ss:$8 sps:$4 sm:$0xff]  }
  0x4a   :  { %1653 = vmatpush1.bf16.msra.mxu0 %v3861_v9  ;;  %v3927_v53 = vld [vmem:[#allocation5 + $0x1f0] ss:$8 sps:$4 sm:$0xff]   ;;  %v3375_v54 = vld [vmem:[#allocation5 + $0x204] ss:$8 sps:$4 sm:$0xff]   ;;  %v3442_v55 = vld [vmem:[#allocation5 + $0xa0] ss:$8 sps:$4 sm:$0xff]  }
  0x4b   :  { %1654 = vmatprep.subr.bf16.mxu0 %v3864_v10  ;;  %1458 = vmatpush1.bf16.msra.mxu1 %v3391_v27  ;;  %v3445_v56 = vld [vmem:[#allocation5 + $0xb4] ss:$8 sps:$4 sm:$0xff]   ;;  %v3368_v57 = vld [vmem:[#allocation2 + $0x8] ss:$28 sps:$4 sm:$0xff]   ;;  %v3451_v61 = vld [vmem:[#allocation5 + $0xb0] ss:$8 sps:$4 sm:$0xff]  }
  0x4c   :  { %1459 = vmatprep.subr.bf16.mxu1 %v3392_v28  ;;  %v3373_v58 = vld [vmem:[#allocation5 + $0x200] ss:$8 sps:$4 sm:$0xff]   ;;  %v3381_v60 = vld [vmem:[#allocation5 + $0x214] ss:$8 sps:$4 sm:$0xff]   ;;  %v3452_v62 = vld [vmem:[#allocation5 + $0xc4] ss:$8 sps:$4 sm:$0xff]  }
  0x4d   :  { %v3383_v59 = vld [vmem:[#allocation2 + $0x44] ss:$28 sps:$4 sm:$0xff]   ;;  %v3379_v63 = vld [vmem:[#allocation5 + $0x210] ss:$8 sps:$4 sm:$0xff]   ;;  %v3460_v17 = vld [vmem:[#allocation5 + $0xd4] ss:$8 sps:$4 sm:$0xff]  }
  0x4e   :  { %1655 = vmatpush1.bf16.msra.mxu0 %v3867_v11  ;;  %v3390_v13 = vld [vmem:[#allocation5 + $0x224] ss:$8 sps:$4 sm:$0xff]   ;;  %v3457_v15 = vld [vmem:[#allocation5 + $0xc0] ss:$8 sps:$4 sm:$0xff]   ;;  %v3398_v21 = vld [vmem:[#allocation2 + $0x7c] ss:$28 sps:$4 sm:$0xff]  }
  0x4f   :  { %1656 = vmatprep.subr.bf16.mxu0 %v3869_v12  ;;  %1460 = vmatpush1.bf16.msra.mxu1 %v3397_v31  ;;  %v3387_v18 = vld [vmem:[#allocation2 + $0x40] ss:$28 sps:$4 sm:$0xff]   ;;  %v3466_v25 = vld [vmem:[#allocation5 + $0xd0] ss:$8 sps:$4 sm:$0xff]   ;;  %v3467_v27 = vld [vmem:[#allocation5 + $0xe4] ss:$8 sps:$4 sm:$0xff]  }
  0x50   :  { %1461 = vmatprep.subr.bf16.mxu1 %v3400_v32  ;;  %v3388_v20 = vld [vmem:[#allocation5 + $0x220] ss:$8 sps:$4 sm:$0xff]   ;;  %v3396_v23 = vld [vmem:[#allocation5 + $0x234] ss:$8 sps:$4 sm:$0xff]   ;;  %v3394_v31 = vld [vmem:[#allocation5 + $0x230] ss:$8 sps:$4 sm:$0xff]  }
  0x51   :  { %v3484_v28 = vld [vmem:[#allocation2 + $0x4] ss:$28 sps:$4 sm:$0xff]  }
  0x52   :  { %1657 = vmatpush1.bf16.msra.mxu0 %v3872_v14  ;;  %v3405_v32 = vld [vmem:[#allocation5 + $0x244] ss:$8 sps:$4 sm:$0xff]   ;;  %1483 = vmatprep.mubr.bf16.mxu1 %v3484_v28 }
  0x53   :  { %1658 = vmatprep.subr.bf16.mxu0 %v3875_v16  ;;  %1462 = vmatpush1.bf16.msra.mxu1 %v3406_v35  ;;  %v3472_v35 = vld [vmem:[#allocation5 + $0xe0] ss:$8 sps:$4 sm:$0xff]   ;;  %v3480_v28 = vld [vmem:[#allocation5 + $0x2e4] ss:$8 sps:$4 sm:$0xff]  }
  0x54   :  { %1463 = vmatprep.subr.bf16.mxu1 %v3407_v36  ;;  %v3475_v36 = vld [vmem:[#allocation5 + $0xf4] ss:$8 sps:$4 sm:$0xff]  }
  0x56   :  { %1659 = vmatpush1.bf16.msra.mxu0 %v3878_v19 }
  0x57   :  { %1660 = vmatprep.subr.bf16.mxu0 %v3882_v22  ;;  %1464 = vmatpush1.bf16.msra.mxu1 %v3412_v39  ;;  %v3402_v39 = vld [vmem:[#allocation2 + $0x78] ss:$28 sps:$4 sm:$0xff]  }
  0x58   :  { %1465 = vmatprep.subr.bf16.mxu1 %v3415_v40  ;;  %v3403_v40 = vld [vmem:[#allocation5 + $0x240] ss:$8 sps:$4 sm:$0xff]  }
  0x5a   :  { %1661 = vmatpush1.bf16.msra.mxu0 %v3885_v24 }
  0x5b   :  { %1662 = vmatprep.subr.bf16.mxu0 %v3888_v26  ;;  %1466 = vmatpush1.bf16.msra.mxu1 %v3421_v43  ;;  %v3411_v43 = vld [vmem:[#allocation5 + $0x254] ss:$8 sps:$4 sm:$0xff]  }
  0x5c   :  { %1467 = vmatprep.subr.bf16.mxu1 %v3422_v44  ;;  %v3413_v44 = vld [vmem:[#allocation2 + $0xb4] ss:$28 sps:$4 sm:$0xff]  }
  0x5e   :  { %1663 = vmatpush1.bf16.msra.mxu0 %v3891_v29 }
  0x5f   :  { %1664 = vmatprep.subr.bf16.mxu0 %v3893_v30  ;;  %1468 = vmatpush1.bf16.msra.mxu1 %v3427_v47  ;;  %v3481_v47 = vld [vmem:[#allocation5 + $0xf0] ss:$8 sps:$4 sm:$0xff]  }
  0x60   :  { %1469 = vmatprep.subr.bf16.mxu1 %v3430_v48  ;;  %v3409_v48 = vld [vmem:[#allocation5 + $0x250] ss:$8 sps:$4 sm:$0xff]  }
  0x62   :  { %1665 = vmatpush1.bf16.msra.mxu0 %v3897_v33 }
  0x63   :  { %1666 = vmatprep.subr.bf16.mxu0 %v3899_v34  ;;  %1470 = vmatpush1.bf16.msra.mxu1 %v3436_v51  ;;  %v3420_v51 = vld [vmem:[#allocation5 + $0x264] ss:$8 sps:$4 sm:$0xff]  }
  0x64   :  { %1471 = vmatprep.subr.bf16.mxu1 %v3437_v52  ;;  %v3482_v52 = vld [vmem:[#allocation2] ss:$28 sps:$4 sm:$0xff]  }
  0x66   :  { %1667 = vmatpush1.bf16.msra.mxu0 %v3903_v37 }
  0x67   :  { %1668 = vmatprep.subr.bf16.mxu0 %v3906_v38  ;;  %1472 = vmatpush1.bf16.msra.mxu1 %v3442_v55  ;;  %v3417_v55 = vld [vmem:[#allocation2 + $0xb0] ss:$28 sps:$4 sm:$0xff]  }
  0x68   :  { %1473 = vmatprep.subr.bf16.mxu1 %v3445_v56  ;;  %v3418_v56 = vld [vmem:[#allocation5 + $0x260] ss:$8 sps:$4 sm:$0xff]  }
  0x6a   :  { %1669 = vmatpush1.bf16.msra.mxu0 %v3909_v41 }
  0x6b   :  { %1670 = vmatprep.subr.bf16.mxu0 %v3912_v42  ;;  %1474 = vmatpush1.bf16.msra.mxu1 %v3451_v61  ;;  %v3496_v61 = vld [vmem:[#allocation2 + $0x38] ss:$28 sps:$4 sm:$0xff]  }
  0x6c   :  { %1475 = vmatprep.subr.bf16.mxu1 %v3452_v62  ;;  %v3432_v62 = vld [vmem:[#allocation2 + $0xe8] ss:$28 sps:$4 sm:$0xff]  }
  0x6e   :  { %1671 = vmatpush1.bf16.msra.mxu0 %v3915_v45 }
  0x6f   :  { %1672 = vmatprep.subr.bf16.mxu0 %v3918_v46  ;;  %1476 = vmatpush1.bf16.msra.mxu1 %v3457_v15  ;;  %v3450_v15 = vld [vmem:[#allocation5 + $0x2a4] ss:$8 sps:$4 sm:$0xff]  }
  0x70   :  { %1477 = vmatprep.subr.bf16.mxu1 %v3460_v17  ;;  %v3509_v17 = vld [vmem:[#allocation2 + $0xac] ss:$28 sps:$4 sm:$0xff]  }
  0x72   :  { %1673 = vmatpush1.bf16.msra.mxu0 %v3921_v49 }
  0x73   :  { %1674 = vmatprep.subr.bf16.mxu0 %v3923_v50  ;;  %1478 = vmatpush1.bf16.msra.mxu1 %v3466_v25  ;;  %v3463_v25 = vld [vmem:[#allocation5 + $0x2c0] ss:$8 sps:$4 sm:$0xff]  }
  0x74   :  { %1479 = vmatprep.subr.bf16.mxu1 %v3467_v27  ;;  %v3473_v27 = vld [vmem:[#allocation2 + $0x194] ss:$28 sps:$4 sm:$0xff]  }
  0x76   :  { %1675 = vmatpush1.bf16.msra.mxu0 %v3927_v53 }
  0x77   :  { %1837 = vmatprep.subr.bf16.mxu0 %v3375_v54  ;;  %1480 = vmatpush1.bf16.msra.mxu1 %v3472_v35  ;;  %v3494_v54 = vld [vmem:[#allocation2 + $0x3c] ss:$28 sps:$4 sm:$0xff]   ;;  %v3490_v35 = vld [vmem:[#allocation2 + $0x14] ss:$28 sps:$4 sm:$0xff]  }
  0x78   :  { %1481 = vmatprep.subr.bf16.mxu1 %v3475_v36  ;;  %v3493_v36 = vld [vmem:[#allocation5 + $0x304] ss:$8 sps:$4 sm:$0xff]  }
  0x79   :  { %1677 = vmatmul.mubr.bf16.vlgmr.msra.gmra.mrb[0].mxu0 %v3368_v57  ;;  %v3428_v57 = vld [vmem:[#allocation2 + $0xec] ss:$28 sps:$4 sm:$0xff]  }
  0x7a   :  { %1838 = vmatpush1.bf16.msra.mxu0 %v3373_v58  ;;  %1686 = vmatprep.mubr.bf16.mxu0 %v3383_v59  ;;  %v3426_v58 = vld [vmem:[#allocation5 + $0x274] ss:$8 sps:$4 sm:$0xff]   ;;  %v3424_v59 = vld [vmem:[#allocation5 + $0x270] ss:$8 sps:$4 sm:$0xff]  }
  0x7b   :  { %1839 = vmatprep.subr.bf16.mxu0 %v3381_v60  ;;  %1482 = vmatpush1.bf16.msra.mxu1 %v3481_v47  ;;  %v3435_v60 = vld [vmem:[#allocation5 + $0x284] ss:$8 sps:$4 sm:$0xff]  }
  0x7c   :  { %3018 = vmatprep.subr.bf16.mxu1 %v3835_v0  ;;  %v3500_v0 = vld [vmem:[#allocation2 + $0x74] ss:$28 sps:$4 sm:$0xff]   ;;  %v3499_v47 = vld [vmem:[#allocation2 + $0x48] ss:$28 sps:$4 sm:$0xff]  }
  0x7e   :  { %1840 = vmatpush1.bf16.msra.mxu0 %v3379_v63  ;;  %1484 = vmatmul.mubr.bf16.vlgmr.msra.gmra.mrb[0].mxu1 %v3482_v52  ;;  %v3433_v63 = vld [vmem:[#allocation5 + $0x280] ss:$8 sps:$4 sm:$0xff]   ;;  %v3538_v52 = vld [vmem:[#allocation5 + $0x334] ss:$8 sps:$4 sm:$0xff]  }
  0x7f   :  { %1841 = vmatprep.subr.bf16.mxu0 %v3390_v13  ;;  %1493 = vmatprep.mubr.bf16.mxu1 %v3494_v54  ;;  %v3443_v13 = vld [vmem:[#allocation2 + $0x124] ss:$28 sps:$4 sm:$0xff]  }
  0x80   :  { %3034 = vmatpush1.bf16.msra.mxu1 %v3837_v1  ;;  %v3441_v1 = vld [vmem:[#allocation5 + $0x294] ss:$8 sps:$4 sm:$0xff]   ;;  %v3545_v54 = vld [vmem:[#allocation2 + $0x1c4] ss:$28 sps:$4 sm:$0xff]  }
  0x81   :  { %1687 = vmatmul.mubr.bf16.gmra.mrb[4].mxu0 %v3387_v18  ;;  %3019 = vmatprep.subr.bf16.mxu1 %v3840_v2  ;;  %v3439_v2 = vld [vmem:[#allocation5 + $0x290] ss:$8 sps:$4 sm:$0xff]   ;;  %v3448_v18 = vld [vmem:[#allocation5 + $0x2a0] ss:$8 sps:$4 sm:$0xff]  }
  0x82   :  { %1842 = vmatpush1.bf16.msra.mxu0 %v3388_v20  ;;  %1696 = vmatprep.mubr.bf16.mxu0 %v3398_v21  ;;  %v3458_v20 = vld [vmem:[#allocation2 + $0x15c] ss:$28 sps:$4 sm:$0xff]   ;;  %v3465_v21 = vld [vmem:[#allocation5 + $0x2c4] ss:$8 sps:$4 sm:$0xff]  }
  0x83   :  { %1843 = vmatprep.subr.bf16.mxu0 %v3396_v23  ;;  %v3515_v23 = vld [vmem:[#allocation2 + $0xe4] ss:$28 sps:$4 sm:$0xff]  }
  0x84   :  { %3035 = vmatpush1.bf16.msra.mxu1 %v3843_v3  ;;  %v3502_v3 = vld [vmem:[#allocation2 + $0x70] ss:$28 sps:$4 sm:$0xff]  }
  0x85   :  { %3020 = vmatprep.subr.bf16.mxu1 %v3846_v4  ;;  %v3447_v4 = vld [vmem:[#allocation2 + $0x120] ss:$28 sps:$4 sm:$0xff]  }
  0x86   :  { %1844 = vmatpush1.bf16.msra.mxu0 %v3394_v31  ;;  %1494 = vmatmul.mubr.bf16.gmra.mrb[4].mxu1 %v3496_v61  ;;  %v3524_v31 = vld [vmem:[#allocation2 + $0x11c] ss:$28 sps:$4 sm:$0xff]   ;;  %v3581_v61 = vld [vmem:[#allocation5 + $0x360] ss:$8 sps:$4 sm:$0xff]  }
  0x87   :  { %1845 = vmatprep.subr.bf16.mxu0 %v3405_v32  ;;  %1503 = vmatprep.mubr.bf16.mxu1 %v3500_v0  ;;  %v3478_v32 = vld [vmem:[#allocation5 + $0x2e0] ss:$8 sps:$4 sm:$0xff]   ;;  %v3560_v0 = vld [vmem:[#allocation2 + $0x234] ss:$28 sps:$4 sm:$0xff]  }
  0x88   :  { %3036 = vmatpush1.bf16.msra.mxu1 %v3849_v5  ;;  %v3456_v5 = vld [vmem:[#allocation5 + $0x2b4] ss:$8 sps:$4 sm:$0xff]  }
  0x89   :  { %1697 = vmatmul.mubr.bf16.gmra.mrb[8].mxu0 %v3402_v39  ;;  %3021 = vmatprep.subr.bf16.mxu1 %v3852_v6  ;;  %v3454_v6 = vld [vmem:[#allocation5 + $0x2b0] ss:$8 sps:$4 sm:$0xff]  }
  0x8a   :  { %1846 = vmatpush1.bf16.msra.mxu0 %v3403_v40  ;;  %1706 = vmatprep.mubr.bf16.mxu0 %v3413_v44  ;;  %v3530_v39 = vld [vmem:[#allocation2 + $0x154] ss:$28 sps:$4 sm:$0xff]   ;;  %v3491_v40 = vld [vmem:[#allocation5 + $0x300] ss:$8 sps:$4 sm:$0xff]   ;;  %v3523_v44 = vld [vmem:[#allocation5 + $0x324] ss:$8 sps:$4 sm:$0xff]  }
  0x8b   :  { %1847 = vmatprep.subr.bf16.mxu0 %v3411_v43  ;;  %v3497_v43 = vld [vmem:[#allocation2 + $0x4c] ss:$28 sps:$4 sm:$0xff]  }
  0x8c   :  { %3037 = vmatpush1.bf16.msra.mxu1 %v3855_v7  ;;  %v3511_v7 = vld [vmem:[#allocation2 + $0xa8] ss:$28 sps:$4 sm:$0xff]  }
  0x8d   :  { %3022 = vmatprep.subr.bf16.mxu1 %v3858_v8  ;;  %v3462_v8 = vld [vmem:[#allocation2 + $0x158] ss:$28 sps:$4 sm:$0xff]  }
  0x8e   :  { %1848 = vmatpush1.bf16.msra.mxu0 %v3409_v48  ;;  %1504 = vmatmul.mubr.bf16.gmra.mrb[8].mxu1 %v3502_v3  ;;  %v3503_v48 = vld [vmem:[#allocation2 + $0x84] ss:$28 sps:$4 sm:$0xff]  }
  0x8f   :  { %1849 = vmatprep.subr.bf16.mxu0 %v3420_v51  ;;  %1513 = vmatprep.mubr.bf16.mxu1 %v3509_v17  ;;  %v3521_v51 = vld [vmem:[#allocation5 + $0x320] ss:$8 sps:$4 sm:$0xff]  }
  0x90   :  { %3038 = vmatpush1.bf16.msra.mxu1 %v3861_v9  ;;  %v3471_v9 = vld [vmem:[#allocation5 + $0x2d4] ss:$8 sps:$4 sm:$0xff]   ;;  %v3575_v3 = vld [vmem:[#allocation2 + $0x2a4] ss:$28 sps:$4 sm:$0xff]  }
  0x91   :  { %1707 = vmatmul.mubr.bf16.gmra.mrb[12].mxu0 %v3417_v55  ;;  %3023 = vmatprep.subr.bf16.mxu1 %v3864_v10  ;;  %v3469_v10 = vld [vmem:[#allocation5 + $0x2d0] ss:$8 sps:$4 sm:$0xff]   ;;  %v3553_v55 = vld [vmem:[#allocation5 + $0x344] ss:$8 sps:$4 sm:$0xff]   ;;  %v3535_v17 = vld [vmem:[#allocation2 + $0x160] ss:$28 sps:$4 sm:$0xff]  }
  0x92   :  { %1850 = vmatpush1.bf16.msra.mxu0 %v3418_v56  ;;  %1716 = vmatprep.mubr.bf16.mxu0 %v3428_v57  ;;  %v3505_v56 = vld [vmem:[#allocation2 + $0x80] ss:$28 sps:$4 sm:$0xff]  }
  0x93   :  { %1851 = vmatprep.subr.bf16.mxu0 %v3426_v58  ;;  %v3551_v57 = vld [vmem:[#allocation5 + $0x340] ss:$8 sps:$4 sm:$0xff]   ;;  %v3566_v58 = vld [vmem:[#allocation5 + $0x350] ss:$8 sps:$4 sm:$0xff]  }
  0x94   :  { %3039 = vmatpush1.bf16.msra.mxu1 %v3867_v11  ;;  %v3517_v11 = vld [vmem:[#allocation2 + $0xe0] ss:$28 sps:$4 sm:$0xff]  }
  0x95   :  { %3024 = vmatprep.subr.bf16.mxu1 %v3869_v12  ;;  %v3477_v12 = vld [vmem:[#allocation2 + $0x190] ss:$28 sps:$4 sm:$0xff]  }
  0x96   :  { %1852 = vmatpush1.bf16.msra.mxu0 %v3424_v59  ;;  %1514 = vmatmul.mubr.bf16.gmra.mrb[12].mxu1 %v3511_v7  ;;  %v3583_v59 = vld [vmem:[#allocation5 + $0x364] ss:$8 sps:$4 sm:$0xff]   ;;  %v3590_v7 = vld [vmem:[#allocation2 + $0x314] ss:$28 sps:$4 sm:$0xff]  }
  0x97   :  { %1853 = vmatprep.subr.bf16.mxu0 %v3435_v60  ;;  %1523 = vmatprep.mubr.bf16.mxu1 %v3515_v23  ;;  %v3514_v60 = vld [vmem:[#allocation2 + $0xb8] ss:$28 sps:$4 sm:$0xff]   ;;  %v3550_v23 = vld [vmem:[#allocation2 + $0x1d0] ss:$28 sps:$4 sm:$0xff]  }
  0x98   :  { %3040 = vmatpush1.bf16.msra.mxu1 %v3872_v14  ;;  %v3487_v14 = vld [vmem:[#allocation5 + $0x2f4] ss:$8 sps:$4 sm:$0xff]  }
  0x99   :  { %1717 = vmatmul.mubr.bf16.gmra.mrb[16].mxu0 %v3432_v62  ;;  %3025 = vmatprep.subr.bf16.mxu1 %v3875_v16  ;;  %v3485_v16 = vld [vmem:[#allocation5 + $0x2f0] ss:$8 sps:$4 sm:$0xff]  }
  0x9a   :  { %1854 = vmatpush1.bf16.msra.mxu0 %v3433_v63  ;;  %1726 = vmatprep.mubr.bf16.mxu0 %v3443_v13  ;;  %v3520_v62 = vld [vmem:[#allocation2 + $0xf0] ss:$28 sps:$4 sm:$0xff]  }
  0x9b   :  { %1855 = vmatprep.subr.bf16.mxu0 %v3441_v1  ;;  %v3527_v63 = vld [vmem:[#allocation2 + $0x12c] ss:$28 sps:$4 sm:$0xff]  }
  0x9c   :  { %3041 = vmatpush1.bf16.msra.mxu1 %v3878_v19  ;;  %v3526_v19 = vld [vmem:[#allocation2 + $0x118] ss:$28 sps:$4 sm:$0xff]   ;;  %v3569_v13 = vld [vmem:[#allocation2 + $0x26c] ss:$28 sps:$4 sm:$0xff]  }
  0x9d   :  { %3026 = vmatprep.subr.bf16.mxu1 %v3882_v22  ;;  %v3488_v22 = vld [vmem:[#allocation2 + $0x10] ss:$28 sps:$4 sm:$0xff]   ;;  %v3529_v1 = vld [vmem:[#allocation2 + $0x128] ss:$28 sps:$4 sm:$0xff]  }
  0x9e   :  { %1856 = vmatpush1.bf16.msra.mxu0 %v3439_v2  ;;  %1524 = vmatmul.mubr.bf16.gmra.mrb[16].mxu1 %v3517_v11  ;;  %v3533_v2 = vld [vmem:[#allocation2 + $0x164] ss:$28 sps:$4 sm:$0xff]   ;;  %v3607_v11 = vld [vmem:[#allocation2 + $0x1cc] ss:$28 sps:$4 sm:$0xff]  }
  0x9f   :  { %1857 = vmatprep.subr.bf16.mxu0 %v3450_v15  ;;  %1533 = vmatprep.mubr.bf16.mxu1 %v3524_v31  ;;  %v3571_v15 = vld [vmem:[#allocation2 + $0x268] ss:$28 sps:$4 sm:$0xff]   ;;  %v3565_v31 = vld [vmem:[#allocation2 + $0x240] ss:$28 sps:$4 sm:$0xff]  }
  0xa0   :  { %3042 = vmatpush1.bf16.msra.mxu1 %v3885_v24  ;;  %v3508_v24 = vld [vmem:[#allocation5 + $0x314] ss:$8 sps:$4 sm:$0xff]  }
  0xa1   :  { %1727 = vmatmul.mubr.bf16.gmra.mrb[20].mxu0 %v3447_v4  ;;  %3027 = vmatprep.subr.bf16.mxu1 %v3888_v26  ;;  %v3506_v26 = vld [vmem:[#allocation5 + $0x310] ss:$8 sps:$4 sm:$0xff]  }
  0xa2   :  { %1858 = vmatpush1.bf16.msra.mxu0 %v3448_v18  ;;  %1736 = vmatprep.mubr.bf16.mxu0 %v3458_v20  ;;  %v3542_v4 = vld [vmem:[#allocation2 + $0x19c] ss:$28 sps:$4 sm:$0xff]  }
  0xa3   :  { %1859 = vmatprep.subr.bf16.mxu0 %v3456_v5  ;;  %v3577_v18 = vld [vmem:[#allocation2 + $0x2a0] ss:$28 sps:$4 sm:$0xff]   ;;  %v3544_v5 = vld [vmem:[#allocation2 + $0x198] ss:$28 sps:$4 sm:$0xff]  }
  0xa4   :  { %3043 = vmatpush1.bf16.msra.mxu1 %v3891_v29  ;;  %v3532_v29 = vld [vmem:[#allocation2 + $0x150] ss:$28 sps:$4 sm:$0xff]   ;;  %v3584_v20 = vld [vmem:[#allocation2 + $0x2dc] ss:$28 sps:$4 sm:$0xff]  }
  0xa5   :  { %3028 = vmatprep.subr.bf16.mxu1 %v3893_v30  ;;  %v3539_v30 = vld [vmem:[#allocation2 + $0x18c] ss:$28 sps:$4 sm:$0xff]  }
  0xa6   :  { %1860 = vmatpush1.bf16.msra.mxu0 %v3454_v6  ;;  %1534 = vmatmul.mubr.bf16.gmra.mrb[20].mxu1 %v3526_v19  ;;  %v3548_v6 = vld [vmem:[#allocation2 + $0x1d4] ss:$28 sps:$4 sm:$0xff]   ;;  %v3613_v19 = vld [vmem:[#allocation2 + $0x23c] ss:$28 sps:$4 sm:$0xff]  }
  0xa7   :  { %1861 = vmatprep.subr.bf16.mxu0 %v3465_v21  ;;  %1543 = vmatprep.mubr.bf16.mxu1 %v3530_v39  ;;  %v3586_v21 = vld [vmem:[#allocation2 + $0x2d8] ss:$28 sps:$4 sm:$0xff]   ;;  %v3580_v39 = vld [vmem:[#allocation2 + $0x2b0] ss:$28 sps:$4 sm:$0xff]  }
  0xa8   :  { %3044 = vmatpush1.bf16.msra.mxu1 %v3897_v33  ;;  %v3536_v33 = vld [vmem:[#allocation5 + $0x330] ss:$8 sps:$4 sm:$0xff]  }
  0xa9   :  { %1737 = vmatmul.mubr.bf16.gmra.mrb[24].mxu0 %v3462_v8  ;;  %3029 = vmatprep.subr.bf16.mxu1 %v3899_v34  ;;  %v3541_v34 = vld [vmem:[#allocation2 + $0x188] ss:$28 sps:$4 sm:$0xff]  }
  0xaa   :  { %1862 = vmatpush1.bf16.msra.mxu0 %v3463_v25  ;;  %1746 = vmatprep.mubr.bf16.mxu0 %v3473_v27  ;;  %v3557_v8 = vld [vmem:[#allocation2 + $0x20c] ss:$28 sps:$4 sm:$0xff]  }
  0xab   :  { %1863 = vmatprep.subr.bf16.mxu0 %v3471_v9  ;;  %v3592_v25 = vld [vmem:[#allocation2 + $0x310] ss:$28 sps:$4 sm:$0xff]   ;;  %v3559_v9 = vld [vmem:[#allocation2 + $0x208] ss:$28 sps:$4 sm:$0xff]  }
  0xac   :  { %3045 = vmatpush1.bf16.msra.mxu1 %v3903_v37  ;;  %v3512_v37 = vld [vmem:[#allocation2 + $0xbc] ss:$28 sps:$4 sm:$0xff]   ;;  %v3599_v27 = vld [vmem:[#allocation2 + $0x34c] ss:$28 sps:$4 sm:$0xff]  }
  0xad   :  { %3030 = vmatprep.subr.bf16.mxu1 %v3906_v38  ;;  %v3568_v38 = vld [vmem:[#allocation5 + $0x354] ss:$8 sps:$4 sm:$0xff]  }
  0xae   :  { %1864 = vmatpush1.bf16.msra.mxu0 %v3469_v10  ;;  %1544 = vmatmul.mubr.bf16.gmra.mrb[24].mxu1 %v3532_v29  ;;  %v3563_v10 = vld [vmem:[#allocation2 + $0x244] ss:$28 sps:$4 sm:$0xff]   ;;  %v3621_v29 = vld [vmem:[#allocation2 + $0x2ac] ss:$28 sps:$4 sm:$0xff]  }
  0xaf   :  { %1865 = vmatprep.subr.bf16.mxu0 %v3480_v28  ;;  %1553 = vmatprep.mubr.bf16.mxu1 %v3539_v30  ;;  %v3601_v28 = vld [vmem:[#allocation2 + $0x348] ss:$28 sps:$4 sm:$0xff]   ;;  %v3602_v30 = vld [vmem:[#allocation2 + $0x35c] ss:$28 sps:$4 sm:$0xff]  }
  0xb0   :  { %3046 = vmatpush1.bf16.msra.mxu1 %v3909_v41  ;;  %v3547_v41 = vld [vmem:[#allocation2 + $0x1c0] ss:$28 sps:$4 sm:$0xff]  }
  0xb1   :  { %1747 = vmatmul.mubr.bf16.gmra.mrb[28].mxu0 %v3477_v12  ;;  %3031 = vmatprep.subr.bf16.mxu1 %v3912_v42  ;;  %v3554_v42 = vld [vmem:[#allocation2 + $0x1fc] ss:$28 sps:$4 sm:$0xff]  }
  0xb2   :  { %1866 = vmatpush1.bf16.msra.mxu0 %v3478_v32  ;;  %1869 = vmatprep.mubr.bf16.mxu0 %v3490_v35  ;;  %v3572_v12 = vld [vmem:[#allocation2 + $0x27c] ss:$28 sps:$4 sm:$0xff]   ;;  %v3605_v32 = vld [vmem:[#allocation2 + $0x1c8] ss:$28 sps:$4 sm:$0xff]  }
  0xb3   :  { %1867 = vmatprep.subr.bf16.mxu0 %v3487_v14  ;;  %v3609_v35 = vld [vmem:[#allocation2 + $0x204] ss:$28 sps:$4 sm:$0xff]   ;;  %v3574_v14 = vld [vmem:[#allocation2 + $0x278] ss:$28 sps:$4 sm:$0xff]  }
  0xb4   :  { %3047 = vmatpush1.bf16.msra.mxu1 %v3915_v45  ;;  %v3518_v45 = vld [vmem:[#allocation2 + $0xf4] ss:$28 sps:$4 sm:$0xff]  }
  0xb5   :  { %3032 = vmatprep.subr.bf16.mxu1 %v3918_v46  ;;  %v3598_v46 = vld [vmem:[#allocation5 + $0x374] ss:$8 sps:$4 sm:$0xff]  }
  0xb6   :  { %1868 = vmatpush1.bf16.msra.mxu0 %v3485_v16  ;;  %1554 = vmatmul.mubr.bf16.gmra.mrb[28].mxu1 %v3541_v34  ;;  %v3578_v16 = vld [vmem:[#allocation2 + $0x2b4] ss:$28 sps:$4 sm:$0xff]   ;;  %v3646_v34 = vld [vmem:[#allocation7] sm:$0xff]  }
  0xb7   :  { %2030 = vmatprep.subr.bf16.mxu0 %v3493_v36  ;;  %1563 = vmatprep.mubr.bf16.mxu1 %v3545_v54  ;;  %v3611_v36 = vld [vmem:[#allocation2 + $0x200] ss:$28 sps:$4 sm:$0xff]   ;;  %v3764_v54 = vmov 0  }
  0xb8   :  { %3048 = vmatpush1.bf16.msra.mxu1 %v3921_v49  ;;  %v3556_v49 = vld [vmem:[#allocation2 + $0x1f8] ss:$28 sps:$4 sm:$0xff]  }
  0xb9   :  { %1870 = vmatmul.mubr.bf16.vlgmr.msra.gmra.mrb[0].mxu0 %v3488_v22  ;;  %3033 = vmatprep.subr.bf16.mxu1 %v3923_v50  ;;  %v3596_v50 = vld [vmem:[#allocation5 + $0x370] ss:$8 sps:$4 sm:$0xff]   ;;  %v3587_v22 = vld [vmem:[#allocation2 + $0x2ec] ss:$28 sps:$4 sm:$0xff]  }
  0xba   :  { %2031 = vmatpush1.bf16.msra.mxu0 %v3491_v40  ;;  %1879 = vmatprep.mubr.bf16.mxu0 %v3497_v43  ;;  %v3615_v40 = vld [vmem:[#allocation2 + $0x238] ss:$28 sps:$4 sm:$0xff]  }
  0xbb   :  { %2032 = vmatprep.subr.bf16.mxu0 %v3508_v24  ;;  %v3617_v43 = vld [vmem:[#allocation2 + $0x274] ss:$28 sps:$4 sm:$0xff]   ;;  %v3589_v24 = vld [vmem:[#allocation2 + $0x2e8] ss:$28 sps:$4 sm:$0xff]  }
  0xbc   :  { %3049 = vmatpush1.bf16.msra.mxu1 %v3927_v53  ;;  %v3562_v53 = vld [vmem:[#allocation2 + $0x230] ss:$28 sps:$4 sm:$0xff]  }
  0xbe   :  { %2033 = vmatpush1.bf16.msra.mxu0 %v3506_v26  ;;  %1564 = vmatmul.mubr.bf16.gmra.mrb[32].mxu1 %v3547_v41  ;;  %v3593_v26 = vld [vmem:[#allocation2 + $0x324] ss:$28 sps:$4 sm:$0xff]   ;;  %v3649_v41 = vld [vmem:[#allocation7 + $0x50] sm:$0xff]  }
  0xbf   :  { %2034 = vmatprep.subr.bf16.mxu0 %v3523_v44  ;;  %1573 = vmatprep.mubr.bf16.mxu1 %v3554_v42  ;;  %v3619_v44 = vld [vmem:[#allocation2 + $0x270] ss:$28 sps:$4 sm:$0xff]  }
  0xc0   :  { %v3650_v42 = vld [vmem:[#allocation7 + $0x10] sm:$0xff]  }
  0xc1   :  { %1880 = vmatmul.mubr.bf16.gmra.mrb[4].mxu0 %v3499_v47  ;;  %v3595_v47 = vld [vmem:[#allocation2 + $0x320] ss:$28 sps:$4 sm:$0xff]  }
  0xc2   :  { %1889 = vmatprep.mubr.bf16.mxu0 %v3503_v48  ;;  %2035 = vmatpush1.bf16.msra.mxu0 %v3521_v51  ;;  %v3623_v48 = vld [vmem:[#allocation2 + $0x2a8] ss:$28 sps:$4 sm:$0xff]  }
  0xc3   :  { %2036 = vmatprep.subr.bf16.mxu0 %v3538_v52  ;;  %v3625_v51 = vld [vmem:[#allocation2 + $0x2e4] ss:$28 sps:$4 sm:$0xff]   ;;  %v3604_v52 = vld [vmem:[#allocation2 + $0x358] ss:$28 sps:$4 sm:$0xff]  }
  0xc6   :  { %2037 = vmatpush1.bf16.msra.mxu0 %v3536_v33  ;;  %1574 = vmatmul.mubr.bf16.gmra.mrb[36].mxu1 %v3556_v49  ;;  %v3645_v33 = vld [vmem:[#allocation7 + $0x40] sm:$0xff]  }
  0xc7   :  { %2038 = vmatprep.subr.bf16.mxu0 %v3553_v55  ;;  %1583 = vmatprep.mubr.bf16.mxu1 %v3560_v0  ;;  %v3627_v55 = vld [vmem:[#allocation2 + $0x2e0] ss:$28 sps:$4 sm:$0xff]   ;;  %v3655_v0 = vld [vmem:[#allocation7 + $0x68] sm:$0xff]  }
  0xc8   :  { %2906 = vmatprep.subr.bf16.mxu1 %v3645_v33  ;;  %v3654_v49 = vld [vmem:[#allocation7 + $0x20] sm:$0xff]  }
  0xc9   :  { %1890 = vmatmul.mubr.bf16.gmra.mrb[8].mxu0 %v3505_v56  ;;  %v3647_v56 = vld [vmem:[#allocation7 + $0x48] sm:$0xff]  }
  0xca   :  { %1899 = vmatprep.mubr.bf16.mxu0 %v3512_v37  ;;  %2039 = vmatpush1.bf16.msra.mxu0 %v3551_v57  ;;  %v3629_v37 = vld [vmem:[#allocation2 + $0x31c] ss:$28 sps:$4 sm:$0xff]   ;;  %v3648_v57 = vld [vmem:[#allocation7 + $0x8] sm:$0xff]  }
  0xcb   :  { %2040 = vmatprep.subr.bf16.mxu0 %v3568_v38  ;;  %v3608_v38 = vld [vmem:[#allocation2 + $0x18] ss:$28 sps:$4 sm:$0xff]  }
  0xce   :  { %2041 = vmatpush1.bf16.msra.mxu0 %v3566_v58  ;;  %1584 = vmatmul.mubr.bf16.gmra.mrb[40].mxu1 %v3562_v53  ;;  %v3651_v58 = vld [vmem:[#allocation7 + $0x58] sm:$0xff]   ;;  %v3657_v53 = vld [vmem:[#allocation7 + $0x70] sm:$0xff]  }
  0xcf   :  { %2042 = vmatprep.subr.bf16.mxu0 %v3583_v59  ;;  %1593 = vmatprep.mubr.bf16.mxu1 %v3569_v13  ;;  %v3631_v59 = vld [vmem:[#allocation2 + $0x318] ss:$28 sps:$4 sm:$0xff]   ;;  %v3620_v13 = vld [vmem:[#allocation2 + $0xc0] ss:$28 sps:$4 sm:$0xff]  }
  0xd1   :  { %1900 = vmatmul.mubr.bf16.gmra.mrb[12].mxu0 %v3514_v60  ;;  %v3633_v60 = vld [vmem:[#allocation2 + $0x354] ss:$28 sps:$4 sm:$0xff]  }
  0xd2   :  { %1909 = vmatprep.mubr.bf16.mxu0 %v3518_v45  ;;  %2043 = vmatpush1.bf16.msra.mxu0 %v3581_v61  ;;  %v3652_v45 = vld [vmem:[#allocation7 + $0x18] sm:$0xff]   ;;  %v3612_v61 = vld [vmem:[#allocation2 + $0x50] ss:$28 sps:$4 sm:$0xff]  }
  0xd3   :  { %2044 = vmatprep.subr.bf16.mxu0 %v3598_v46  ;;  %v3653_v46 = vld [vmem:[#allocation7 + $0x60] sm:$0xff]  }
  0xd6   :  { %2045 = vmatpush1.bf16.msra.mxu0 %v3596_v50  ;;  %1594 = vmatmul.mubr.bf16.gmra.mrb[44].mxu1 %v3571_v15  ;;  %v3635_v50 = vld [vmem:[#allocation2 + $0x350] ss:$28 sps:$4 sm:$0xff]  }
  0xd7   :  { %1603 = vmatprep.mubr.bf16.mxu1 %v3575_v3 }
  0xd9   :  { %1910 = vmatmul.mubr.bf16.gmra.mrb[16].mxu0 %v3520_v62  ;;  %v3656_v62 = vld [vmem:[#allocation7 + $0x28] sm:$0xff]  }
  0xda   :  { %1919 = vmatprep.mubr.bf16.mxu0 %v3527_v63  ;;  %v3616_v63 = vld [vmem:[#allocation2 + $0x88] ss:$28 sps:$4 sm:$0xff]  }
  0xde   :  { %1604 = vmatmul.mubr.bf16.gmra.mrb[48].mxu1 %v3577_v18 }
  0xdf   :  { %1613 = vmatprep.mubr.bf16.mxu1 %v3584_v20  ;;  %v3632_v20 = vld [vmem:[#allocation2 + $0x168] ss:$28 sps:$4 sm:$0xff]  }
  0xe1   :  { %1920 = vmatmul.mubr.bf16.gmra.mrb[20].mxu0 %v3529_v1  ;;  %v3624_v1 = vld [vmem:[#allocation2 + $0xf8] ss:$28 sps:$4 sm:$0xff]  }
  0xe2   :  { %1929 = vmatprep.mubr.bf16.mxu0 %v3533_v2  ;;  %v3628_v2 = vld [vmem:[#allocation2 + $0x130] ss:$28 sps:$4 sm:$0xff]  }
  0xe6   :  { %1614 = vmatmul.mubr.bf16.gmra.mrb[52].mxu1 %v3586_v21 }
  0xe7   :  { %1623 = vmatprep.mubr.bf16.mxu1 %v3590_v7 }
  0xe9   :  { %1930 = vmatmul.mubr.bf16.gmra.mrb[24].mxu0 %v3535_v17  ;;  %v3658_v17 = vld [vmem:[#allocation7 + $0x30] sm:$0xff]  }
  0xea   :  { %1939 = vmatprep.mubr.bf16.mxu0 %v3542_v4 }
  0xee   :  { %1624 = vmatmul.mubr.bf16.gmra.mrb[56].mxu1 %v3592_v25 }
  0xef   :  { %1633 = vmatprep.mubr.bf16.mxu1 %v3599_v27 }
  0xf1   :  { %1940 = vmatmul.mubr.bf16.gmra.mrb[28].mxu0 %v3544_v5 }
  0xf2   :  { %1949 = vmatprep.mubr.bf16.mxu0 %v3548_v6 }
  0xf6   :  { %1634 = vmatmul.mubr.bf16.gmra.mrb[60].mxu1 %v3601_v28 }
  0xf7   :  { %1756 = vmatprep.mubr.bf16.mxu1 %v3607_v11 }
  0xf9   :  { %1950 = vmatmul.mubr.bf16.gmra.mrb[32].mxu0 %v3550_v23  ;;  %v3636_v23 = vld [vmem:[#allocation2 + $0x1a0] ss:$28 sps:$4 sm:$0xff]  }
  0xfa   :  { %1959 = vmatprep.mubr.bf16.mxu0 %v3557_v8 }
  0xfe   :  { %1757 = vmatmul.mubr.bf16.vlgmr.msra.gmra.mrb[32].mxu1 %v3605_v32  ;;  %v3638_v32 = vld [vmem:[#allocation2 + $0x210] ss:$28 sps:$4 sm:$0xff]  }
  0xff   :  { %1766 = vmatprep.mubr.bf16.mxu1 %v3609_v35  ;;  %2907 = vmatpush3.bf16.msra.mxu1 %v3646_v34 }
 0x100   :  { %2908 = vmatprep.subr.bf16.mxu1 %v3647_v56  ;;  %v3642_v56 = vld [vmem:[#allocation2 + $0x2f0] ss:$28 sps:$4 sm:$0xff]  }
 0x101   :  { %1960 = vmatmul.mubr.bf16.gmra.mrb[36].mxu0 %v3559_v9 }
 0x102   :  { %1969 = vmatprep.mubr.bf16.mxu0 %v3563_v10  ;;  %v3637_v10 = vld [vmem:[#allocation2 + $0x1d8] ss:$28 sps:$4 sm:$0xff]  }
 0x103   :  { %2909 = vmatpush3.bf16.msra.mxu1 %v3648_v57  ;;  %v3644_v57 = vld [vmem:[#allocation2 + $0x360] ss:$28 sps:$4 sm:$0xff]  }
 0x104   :  { %2910 = vmatprep.subr.bf16.mxu1 %v3649_v41 }
 0x106   :  { %1767 = vmatmul.mubr.bf16.gmra.mrb[36].mxu1 %v3611_v36 }
 0x107   :  { %1776 = vmatprep.mubr.bf16.mxu1 %v3613_v19  ;;  %2911 = vmatpush3.bf16.msra.mxu1 %v3650_v42  ;;  %v3639_v19 = vld [vmem:[#allocation2 + $0x248] ss:$28 sps:$4 sm:$0xff]  }
 0x108   :  { %2912 = vmatprep.subr.bf16.mxu1 %v3651_v58 }
 0x109   :  { %1970 = vmatmul.mubr.bf16.gmra.mrb[40].mxu0 %v3565_v31 }
 0x10a   :  { %1979 = vmatprep.mubr.bf16.mxu0 %v3572_v12 }
 0x10b   :  { %2913 = vmatpush3.bf16.msra.mxu1 %v3652_v45 }
 0x10c   :  { %2914 = vmatprep.subr.bf16.mxu1 %v3653_v46 }
 0x10e   :  { %1777 = vmatmul.mubr.bf16.gmra.mrb[40].mxu1 %v3615_v40 }
 0x10f   :  { %1786 = vmatprep.mubr.bf16.mxu1 %v3617_v43  ;;  %2915 = vmatpush3.bf16.msra.mxu1 %v3654_v49 }
 0x110   :  { %2916 = vmatprep.subr.bf16.mxu1 %v3655_v0 }
 0x111   :  { %1980 = vmatmul.mubr.bf16.gmra.mrb[44].mxu0 %v3574_v14 }
 0x112   :  { %1989 = vmatprep.mubr.bf16.mxu0 %v3578_v16 }
 0x113   :  { %2917 = vmatpush3.bf16.msra.mxu1 %v3656_v62 }
 0x114   :  { %2918 = vmatprep.subr.bf16.mxu1 %v3657_v53 }
 0x116   :  { %1787 = vmatmul.mubr.bf16.gmra.mrb[44].mxu1 %v3619_v44  ;;  %v3659_v44 = vld [vmem:[#allocation7 + $0x78] sm:$0xff]  }
 0x117   :  { %1796 = vmatprep.mubr.bf16.mxu1 %v3621_v29  ;;  %2919 = vmatpush3.bf16.msra.mxu1 %v3658_v17 }
 0x118   :  { %2920 = vmatprep.subr.bf16.mxu1 %v3659_v44 }
 0x119   :  { %1990 = vmatmul.mubr.bf16.gmra.mrb[48].mxu0 %v3580_v39 }
 0x11a   :  { %1999 = vmatprep.mubr.bf16.mxu0 %v3587_v22 }
 0x11e   :  { %1797 = vmatmul.mubr.bf16.gmra.mrb[48].mxu1 %v3623_v48 }
 0x11f   :  { %1806 = vmatprep.mubr.bf16.mxu1 %v3625_v51  ;;  %v3641_v51 = vld [vmem:[#allocation2 + $0x2b8] ss:$28 sps:$4 sm:$0xff]  }
 0x121   :  { %2000 = vmatmul.mubr.bf16.gmra.mrb[52].mxu0 %v3589_v24  ;;  %v3640_v24 = vld [vmem:[#allocation2 + $0x280] ss:$28 sps:$4 sm:$0xff]  }
 0x122   :  { %2009 = vmatprep.mubr.bf16.mxu0 %v3593_v26 }
 0x126   :  { %1807 = vmatmul.mubr.bf16.gmra.mrb[52].mxu1 %v3627_v55 }
 0x127   :  { %1816 = vmatprep.mubr.bf16.mxu1 %v3629_v37  ;;  %v3643_v37 = vld [vmem:[#allocation2 + $0x328] ss:$28 sps:$4 sm:$0xff]  }
 0x129   :  { %2010 = vmatmul.mubr.bf16.gmra.mrb[56].mxu0 %v3595_v47  ;;  %v3660_v47 = vld [vmem:[#allocation7 + $0x38] sm:$0xff]  }
 0x12a   :  { %2019 = vmatprep.mubr.bf16.mxu0 %v3602_v30  ;;  %2921 = vmatpush3.bf16.msra.mxu1 %v3660_v47 }
 0x12e   :  { %1817 = vmatmul.mubr.bf16.gmra.mrb[56].mxu1 %v3631_v59 }
 0x12f   :  { %1826 = vmatprep.mubr.bf16.mxu1 %v3633_v60 }
 0x131   :  { %2020 = vmatmul.mubr.bf16.gmra.mrb[60].mxu0 %v3604_v52 }
 0x132   :  { %2062 = vmatprep.mubr.bf16.mxu0 %v3764_v54 }
 0x136   :  { %1827 = vmatmul.mubr.bf16.gmra.mrb[60].mxu1 %v3635_v50 }
 0x139   :  { %2063 = vmatmul.mubr.bf16.vlgmr.msra.gmra.mrb[0].mxu0 %v3608_v38 }
 0x13a   :  { %2072 = vmatprep.mubr.bf16.mxu0 %v3764_v54 }
 0x141   :  { %2073 = vmatmul.mubr.bf16.gmra.mrb[4].mxu0 %v3612_v61 }
 0x142   :  { %2082 = vmatprep.mubr.bf16.mxu0 %v3764_v54 }
 0x149   :  { %2083 = vmatmul.mubr.bf16.gmra.mrb[8].mxu0 %v3616_v63  ;;  %v305_v63 = vlaneseq }
 0x14a   :  { %2092 = vmatprep.mubr.bf16.mxu0 %v3764_v54 }
 0x151   :  { %2093 = vmatmul.mubr.bf16.gmra.mrb[12].mxu0 %v3620_v13  ;;  %v3969_v15 = vpop.f32.mrb[0].mxu1 }
 0x152   :  { %2102 = vmatprep.mubr.bf16.mxu0 %v3764_v54  ;;  %v3972_v3 = vpop.f32.mrb[1].mxu1 }
 0x153   :  { %v3974_v4 = vpop.f32.mrb[2].mxu1 }
 0x154   :  { %v3976_v18 = vpop.f32.mrb[3].mxu1 }
 0x159   :  { %2103 = vmatmul.mubr.bf16.gmra.mrb[16].mxu0 %v3624_v1  ;;  %v3978_v5 = vpop.f32.mrb[4].mxu1  ;;  %v306_v1 = vshrl.u32 %v305_v63, 7 }
 0x15a   :  { %2112 = vmatprep.mubr.bf16.mxu0 %v3764_v54  ;;  %v3981_v6 = vpop.f32.mrb[5].mxu1 }
 0x15b   :  { %v3983_v21 = vpop.f32.mrb[6].mxu1 }
 0x15c   :  { %v3985_v7 = vpop.f32.mrb[7].mxu1 }
 0x161   :  { %2113 = vmatmul.mubr.bf16.gmra.mrb[20].mxu0 %v3628_v2  ;;  %v3987_v8 = vpop.f32.mrb[8].mxu1 }
 0x162   :  { %2122 = vmatprep.mubr.bf16.mxu0 %v3764_v54  ;;  %v3990_v25 = vpop.f32.mrb[9].mxu1 }
 0x163   :  { %v3992_v27 = vpop.f32.mrb[10].mxu1 }
 0x164   :  { %v3994_v9 = vpop.f32.mrb[11].mxu1 }
 0x169   :  { %2123 = vmatmul.mubr.bf16.gmra.mrb[24].mxu0 %v3632_v20  ;;  %v3996_v28 = vpop.f32.mrb[12].mxu1  ;;  %v307_v20 = vsub.s32 0, %v306_v1 }
 0x16a   :  { %2132 = vmatprep.mubr.bf16.mxu0 %v3764_v54  ;;  %v3999_v11 = vpop.f32.mrb[13].mxu1 }
 0x16b   :  { %v4001_v31 = vpop.f32.mrb[14].mxu1 }
 0x16c   :  { %v4003_v12 = vpop.f32.mrb[15].mxu1 }
 0x171   :  { %2133 = vmatmul.mubr.bf16.gmra.mrb[28].mxu0 %v3636_v23  ;;  %v4005_v35 = vpop.f32.mrb[16].mxu1 }
 0x172   :  { %2142 = vmatprep.mubr.bf16.mxu0 %v3764_v54  ;;  %v4008_v14 = vpop.f32.mrb[17].mxu1 }
 0x173   :  { %v4010_v16 = vpop.f32.mrb[18].mxu1 }
 0x174   :  { %v4012_v36 = vpop.f32.mrb[19].mxu1 }
 0x179   :  { %2143 = vmatmul.mubr.bf16.gmra.mrb[32].mxu0 %v3637_v10  ;;  %v4014_v39 = vpop.f32.mrb[20].mxu1  ;;  %v303_v10 = vld [vmem:[%s4296_s2] sm:$0x3] }
 0x17a   :  { %2152 = vmatprep.mubr.bf16.mxu0 %v3764_v54  ;;  %v4017_v22 = vpop.f32.mrb[21].mxu1 }
 0x17b   :  { %v4019_v40 = vpop.f32.mrb[22].mxu1 }
 0x17c   :  { %v4021_v43 = vpop.f32.mrb[23].mxu1 }
 0x181   :  { %2153 = vmatmul.mubr.bf16.gmra.mrb[36].mxu0 %v3638_v32  ;;  %v4023_v26 = vpop.f32.mrb[24].mxu1  ;;  %v311_v32 = vsub.s32 1, %v306_v1 }
 0x182   :  { %2162 = vmatprep.mubr.bf16.mxu0 %v3764_v54  ;;  %v4026_v29 = vpop.f32.mrb[25].mxu1 }
 0x183   :  { %v4028_v30 = vpop.f32.mrb[26].mxu1  ;;  %v4088_v44 = vrot.slane %v303_v10, %v311_v32 }
 0x184   :  { %v4030_v48 = vpop.f32.mrb[27].mxu1 }
 0x189   :  { %2163 = vmatmul.mubr.bf16.gmra.mrb[40].mxu0 %v3639_v19  ;;  %v4032_v52 = vpop.f32.mrb[28].mxu1 }
 0x18a   :  { %2172 = vmatprep.mubr.bf16.mxu0 %v3764_v54  ;;  %v4035_v33 = vpop.f32.mrb[29].mxu1 }
 0x18b   :  { %v4037_v34 = vpop.f32.mrb[30].mxu1 }
 0x18c   :  { %v4039_v55 = vpop.f32.mrb[31].mxu1 }
 0x191   :  { %2173 = vmatmul.mubr.bf16.gmra.mrb[44].mxu0 %v3640_v24  ;;  %v4086_v24 = vrot.slane %v303_v10, %v307_v20 }
 0x192   :  { %2182 = vmatprep.mubr.bf16.mxu0 %v3764_v54 }
 0x193   :  { %v1490_v20 = vadd.f32 %v3974_v4, %v4086_v24  ;;  %v1496_v4 = vadd.f32 %v3978_v5, %v4086_v24 }
 0x199   :  { %2183 = vmatmul.mubr.bf16.gmra.mrb[48].mxu0 %v3641_v51 }
 0x19a   :  { %2192 = vmatprep.mubr.bf16.mxu0 %v3764_v54 }
 0x1a1   :  { %2193 = vmatmul.mubr.bf16.gmra.mrb[52].mxu0 %v3642_v56  ;;  %v1486_v56 = vadd.f32 %v3969_v15, %v4086_v24 }
 0x1a2   :  { %2202 = vmatprep.mubr.bf16.mxu0 %v3764_v54 }
 0x1a9   :  { %2203 = vmatmul.mubr.bf16.gmra.mrb[56].mxu0 %v3643_v37 }
 0x1aa   :  { %2212 = vmatprep.mubr.bf16.mxu0 %v3764_v54 }
 0x1b1   :  { %2213 = vmatmul.mubr.bf16.gmra.mrb[60].mxu0 %v3644_v57  ;;  %v1488_v57 = vadd.f32 %v3972_v3, %v4088_v44 }
 0x1d1   :  { %v4043_v38 = vpop.f32.mrb[32].mxu1 }
 0x1d2   :  { %v4045_v41 = vpop.f32.mrb[33].mxu1 }
 0x1d3   :  { %v4047_v42 = vpop.f32.mrb[34].mxu1 }
 0x1d4   :  { %v4049_v58 = vpop.f32.mrb[35].mxu1 }
 0x1d9   :  { %v4051_v59 = vpop.f32.mrb[36].mxu1 }
 0x1da   :  { %v4053_v60 = vpop.f32.mrb[37].mxu1 }
 0x1db   :  { %v4055_v45 = vpop.f32.mrb[38].mxu1 }
 0x1dc   :  { %v4057_v61 = vpop.f32.mrb[39].mxu1 }
 0x1e1   :  { %v4059_v46 = vpop.f32.mrb[40].mxu1 }
 0x1e2   :  { %v4061_v54 = vpop.f32.mrb[41].mxu1 }
 0x1e3   :  { %v4063_v49 = vpop.f32.mrb[42].mxu1 }
 0x1e4   :  { %v4065_v0 = vpop.f32.mrb[43].mxu1 }
 0x1e9   :  { %v4067_v50 = vpop.f32.mrb[44].mxu1 }
 0x1ea   :  { %v4069_v62 = vpop.f32.mrb[45].mxu1 }
 0x1eb   :  { %v4071_v53 = vpop.f32.mrb[46].mxu1 }
 0x1ec   :  { %4300 = vst [vmem:[#allocation12_spill] sm:$0xff] %v4071_v53  ;;  %v4073_v13 = vpop.f32.mrb[47].mxu1 }
 0x1ed   :  { %4301 = vst [vmem:[#allocation13_spill] sm:$0xff] %v4073_v13 }
 0x1f1   :  { %v4075_v2 = vpop.f32.mrb[48].mxu1 }
 0x1f2   :  { %4302 = vst [vmem:[#allocation14_spill] sm:$0xff] %v4075_v2  ;;  %v4077_v17 = vpop.f32.mrb[49].mxu1 }
 0x1f3   :  { %4303 = vst [vmem:[#allocation15_spill] sm:$0xff] %v4077_v17  ;;  %v4079_v23 = vpop.f32.mrb[50].mxu1 }
 0x1f4   :  { %4304 = vst [vmem:[#allocation16_spill] sm:$0xff] %v4079_v23  ;;  %v4084_v19 = vpop.f32.mrb[51].mxu1 }
 0x1f5   :  { %4305 = vst [vmem:[#allocation17_spill] sm:$0xff] %v4084_v19 }
 0x1f9   :  { %v4090_v47 = vpop.f32.mrb[52].mxu1 }
 0x1fa   :  { %4306 = vst [vmem:[#allocation18_spill] sm:$0xff] %v4090_v47  ;;  %v4092_v51 = vpop.f32.mrb[53].mxu1  ;;  %v1492_v47 = vadd.f32 %v3976_v18, %v4088_v44  ;;  %v1498_v18 = vadd.f32 %v3981_v6, %v4088_v44 }
 0x1fb   :  { %4307 = vst [vmem:[#allocation19_spill] sm:$0xff] %v4092_v51  ;;  %v4096_v37 = vpop.f32.mrb[54].mxu1 }
 0x1fc   :  { %4308 = vst [vmem:[#allocation20_spill] sm:$0xff] %v4096_v37  ;;  %v4100_v1 = vpop.f32.mrb[55].mxu1 }
 0x1fd   :  { %4309 = vst [vmem:[#allocation21_spill] sm:$0xff] %v4100_v1 }
 0x201   :  { %v4106_v13 = vpop.f32.mrb[56].mxu1 }
 0x202   :  { %v4108_v1 = vpop.f32.mrb[57].mxu1 }
 0x20c   :  { %v2064_v63 = vpop.f32.mrb[0].mxu0 }
 0x20d   :  { %v3051_v10 = vadd.f32 %v2064_v63, %v1486_v56  ;;  %v2066_v32 = vpop.f32.mrb[1].mxu0  ;;  %v4112_v63 = vpop.f32.mrb[58].mxu1 }
 0x20e   :  { %v3053_v51 = vadd.f32 %v2066_v32, %v1488_v57  ;;  %v2068_v19 = vpop.f32.mrb[2].mxu0  ;;  %4310 = vst [vmem:[#allocation22_spill] sm:$0xff] %v4112_v63 }
 0x20f   :  { %v3055_v23 = vadd.f32 %v2068_v19, %v1490_v20  ;;  %v2070_v15 = vpop.f32.mrb[3].mxu0  ;;  %v2223_v37 = vmax.f32 %v3051_v10, 0.0  ;;  %v1502_v20 = vadd.f32 %v3985_v7, %v4088_v44 }
 0x210   :  { %v3057_v17 = vadd.f32 %v2070_v15, %v1492_v47  ;;  %v2224_v3 = vmax.f32 %v3053_v51, 0.0  ;;  %v4116_v47 = vpop.f32.mrb[59].mxu1 }
 0x211   :  { %v2225_v2 = vmax.f32 %v3055_v23, 0.0  ;;  %4311 = vst [vmem:[#allocation23_spill] sm:$0xff] %v4116_v47  ;;  %v1500_v23 = vadd.f32 %v3983_v21, %v4086_v24  ;;  %v4122_v15 = vpop.f32.mrb[60].mxu1  ;;  %v1506_v21 = vadd.f32 %v3987_v8, %v4086_v24 }
 0x212   :  { %v2226_v53 = vmax.f32 %v3057_v17, 0.0  ;;  %v4124_v63 = vpop.f32.mrb[61].mxu1 }
 0x213   :  { %v2287_v56 = vpack.c.bf16 %v2225_v2, %v2223_v37  ;;  %v4128_v7 = vpop.f32.mrb[62].mxu1 }
 0x214   :  { %v2288_v19 = vpack.c.bf16 %v2226_v53, %v2224_v3  ;;  %v2074_v57 = vpop.f32.mrb[4].mxu0 }
 0x215   :  { %v3059_v51 = vadd.f32 %v2074_v57, %v1496_v4  ;;  %v2076_v17 = vpop.f32.mrb[5].mxu0  ;;  %v4132_v57 = vpop.f32.mrb[63].mxu1 }
 0x216   :  { %v3061_v10 = vadd.f32 %v2076_v17, %v1498_v18  ;;  %v2078_v5 = vpop.f32.mrb[6].mxu0  ;;  %2486 = vmatprep.mubr.bf16.mxu1 %v2288_v19  ;;  %v1508_v18 = vadd.f32 %v3990_v25, %v4088_v44 }
 0x217   :  { %v3063_v2 = vadd.f32 %v2078_v5, %v1500_v23  ;;  %v2080_v37 = vpop.f32.mrb[7].mxu0  ;;  %2487 = vmatmul.mubr.bf16.vlgmr.msra.gmra.mrb[64].mxu1 %v2287_v56  ;;  %v2227_v6 = vmax.f32 %v3059_v51, 0.0  ;;  %v1510_v23 = vadd.f32 %v3992_v27, %v4086_v24 }
 0x218   :  { %v3065_v32 = vadd.f32 %v2080_v37, %v1502_v20  ;;  %v2228_v3 = vmax.f32 %v3061_v10, 0.0  ;;  %v1512_v20 = vadd.f32 %v3994_v9, %v4088_v44 }
 0x219   :  { %v2229_v53 = vmax.f32 %v3063_v2, 0.0 }
 0x21a   :  { %v2230_v47 = vmax.f32 %v3065_v32, 0.0 }
 0x21b   :  { %v2289_v4 = vpack.c.bf16 %v2229_v53, %v2227_v6  ;;  %v1516_v53 = vadd.f32 %v3996_v28, %v4086_v24 }
 0x21c   :  { %v2290_v19 = vpack.c.bf16 %v2230_v47, %v2228_v3  ;;  %v2084_v56 = vpop.f32.mrb[8].mxu0  ;;  %v1518_v3 = vadd.f32 %v3999_v11, %v4088_v44 }
 0x21d   :  { %v3067_v51 = vadd.f32 %v2084_v56, %v1506_v21  ;;  %v2086_v17 = vpop.f32.mrb[9].mxu0 }
 0x21e   :  { %v3069_v10 = vadd.f32 %v2086_v17, %v1508_v18  ;;  %v2088_v8 = vpop.f32.mrb[10].mxu0  ;;  %2494 = vmatprep.mubr.bf16.mxu1 %v2290_v19  ;;  %v1520_v18 = vadd.f32 %v4001_v31, %v4086_v24 }
 0x21f   :  { %v3071_v5 = vadd.f32 %v2088_v8, %v1510_v23  ;;  %v2090_v2 = vpop.f32.mrb[11].mxu0  ;;  %2495 = vmatmul.mubr.bf16.gmra.mrb[68].mxu1 %v2289_v4  ;;  %v2231_v25 = vmax.f32 %v3067_v51, 0.0  ;;  %v1522_v4 = vadd.f32 %v4003_v12, %v4088_v44 }
 0x220   :  { %v3073_v37 = vadd.f32 %v2090_v2, %v1512_v20  ;;  %v2232_v32 = vmax.f32 %v3069_v10, 0.0  ;;  %v1526_v2 = vadd.f32 %v4005_v35, %v4086_v24 }
 0x221   :  { %v2233_v47 = vmax.f32 %v3071_v5, 0.0 }
 0x222   :  { %v2234_v6 = vmax.f32 %v3073_v37, 0.0  ;;  %v1528_v37 = vadd.f32 %v4008_v14, %v4088_v44 }
 0x223   :  { %v2291_v27 = vpack.c.bf16 %v2233_v47, %v2231_v25  ;;  %v1530_v47 = vadd.f32 %v4010_v16, %v4086_v24 }
 0x224   :  { %v2292_v21 = vpack.c.bf16 %v2234_v6, %v2232_v32  ;;  %v2094_v9 = vpop.f32.mrb[12].mxu0 }
 0x225   :  { %v3075_v19 = vadd.f32 %v2094_v9, %v1516_v53  ;;  %v2096_v56 = vpop.f32.mrb[13].mxu0  ;;  %v1532_v53 = vadd.f32 %v4012_v36, %v4088_v44 }
 0x226   :  { %v3077_v23 = vadd.f32 %v2096_v56, %v1518_v3  ;;  %v2098_v51 = vpop.f32.mrb[14].mxu0  ;;  %2502 = vmatprep.mubr.bf16.mxu1 %v2292_v21 }
 0x227   :  { %v3079_v17 = vadd.f32 %v2098_v51, %v1520_v18  ;;  %v2100_v20 = vpop.f32.mrb[15].mxu0  ;;  %2503 = vmatmul.mubr.bf16.gmra.mrb[72].mxu1 %v2291_v27  ;;  %v2235_v10 = vmax.f32 %v3075_v19, 0.0 }
 0x228   :  { %v3081_v28 = vadd.f32 %v2100_v20, %v1522_v4  ;;  %v2236_v11 = vmax.f32 %v3077_v23, 0.0  ;;  %v1536_v4 = vadd.f32 %v4014_v39, %v4086_v24  ;;  %v1538_v23 = vadd.f32 %v4017_v22, %v4088_v44 }
 0x229   :  { %v2237_v8 = vmax.f32 %v3079_v17, 0.0  ;;  %v1540_v17 = vadd.f32 %v4019_v40, %v4086_v24 }
 0x22a   :  { %v2238_v5 = vmax.f32 %v3081_v28, 0.0 }
 0x22b   :  { %v2293_v31 = vpack.c.bf16 %v2237_v8, %v2235_v10  ;;  %v1542_v10 = vadd.f32 %v4021_v43, %v4088_v44 }
 0x22c   :  { %v2294_v25 = vpack.c.bf16 %v2238_v5, %v2236_v11  ;;  %v2104_v12 = vpop.f32.mrb[16].mxu0 }
 0x22d   :  { %v3083_v32 = vadd.f32 %v2104_v12, %v1526_v2  ;;  %v2106_v6 = vpop.f32.mrb[17].mxu0  ;;  %v1546_v12 = vadd.f32 %v4023_v26, %v4086_v24 }
 0x22e   :  { %v3085_v27 = vadd.f32 %v2106_v6, %v1528_v37  ;;  %v2108_v3 = vpop.f32.mrb[18].mxu0  ;;  %2510 = vmatprep.mubr.bf16.mxu1 %v2294_v25  ;;  %v1550_v6 = vadd.f32 %v4028_v30, %v4086_v24 }
 0x22f   :  { %v3087_v21 = vadd.f32 %v2108_v3, %v1530_v47  ;;  %v2110_v9 = vpop.f32.mrb[19].mxu0  ;;  %2511 = vmatmul.mubr.bf16.gmra.mrb[76].mxu1 %v2293_v31  ;;  %v2239_v18 = vmax.f32 %v3083_v32, 0.0  ;;  %v1548_v47 = vadd.f32 %v4026_v29, %v4088_v44  ;;  %v1552_v3 = vadd.f32 %v4030_v48, %v4088_v44 }
 0x230   :  { %v3089_v35 = vadd.f32 %v2110_v9, %v1532_v53  ;;  %v2240_v14 = vmax.f32 %v3085_v27, 0.0 }
 0x231   :  { %v2241_v19 = vmax.f32 %v3087_v21, 0.0 }
 0x232   :  { %v2242_v56 = vmax.f32 %v3089_v35, 0.0 }
 0x233   :  { %v2295_v16 = vpack.c.bf16 %v2241_v19, %v2239_v18 }
 0x234   :  { %v2296_v51 = vpack.c.bf16 %v2242_v56, %v2240_v14  ;;  %v2114_v36 = vpop.f32.mrb[20].mxu0 }
 0x235   :  { %v3091_v20 = vadd.f32 %v2114_v36, %v1536_v4  ;;  %v2116_v28 = vpop.f32.mrb[21].mxu0  ;;  %v1556_v4 = vadd.f32 %v4032_v52, %v4086_v24 }
 0x236   :  { %v3093_v8 = vadd.f32 %v2116_v28, %v1538_v23  ;;  %v2118_v11 = vpop.f32.mrb[22].mxu0  ;;  %2518 = vmatprep.mubr.bf16.mxu1 %v2296_v51  ;;  %v1560_v51 = vadd.f32 %v4037_v34, %v4086_v24 }
 0x237   :  { %v3095_v5 = vadd.f32 %v2118_v11, %v1540_v17  ;;  %v2120_v2 = vpop.f32.mrb[23].mxu0  ;;  %2519 = vmatmul.mubr.bf16.gmra.mrb[80].mxu1 %v2295_v16  ;;  %v2243_v31 = vmax.f32 %v3091_v20, 0.0  ;;  %v1558_v16 = vadd.f32 %v4035_v33, %v4088_v44  ;;  %v1562_v20 = vadd.f32 %v4039_v55, %v4088_v44 }
 0x238   :  { %v3097_v39 = vadd.f32 %v2120_v2, %v1542_v10  ;;  %v2244_v22 = vmax.f32 %v3093_v8, 0.0 }
 0x239   :  { %v2245_v37 = vmax.f32 %v3095_v5, 0.0 }
 0x23a   :  { %v2246_v25 = vmax.f32 %v3097_v39, 0.0 }
 0x23b   :  { %v2297_v40 = vpack.c.bf16 %v2245_v37, %v2243_v31  ;;  %v3114_v31 = vadd.f32 %v4043_v38, %v4086_v24  ;;  %v3116_v37 = vadd.f32 %v4045_v41, %v4088_v44 }
 0x23c   :  { %v2298_v32 = vpack.c.bf16 %v2246_v25, %v2244_v22  ;;  %v2124_v43 = vpop.f32.mrb[24].mxu0  ;;  %v3118_v25 = vadd.f32 %v4047_v42, %v4086_v24 }
 0x23d   :  { %v3099_v53 = vadd.f32 %v2124_v43, %v1546_v12  ;;  %v2126_v27 = vpop.f32.mrb[25].mxu0 }
 0x23e   :  { %v3101_v21 = vadd.f32 %v2126_v27, %v1548_v47  ;;  %v2128_v9 = vpop.f32.mrb[26].mxu0  ;;  %2526 = vmatprep.mubr.bf16.mxu1 %v2298_v32  ;;  %v3120_v47 = vadd.f32 %v4049_v58, %v4088_v44 }
 0x23f   :  { %v3103_v35 = vadd.f32 %v2128_v9, %v1550_v6  ;;  %v2130_v18 = vpop.f32.mrb[27].mxu0  ;;  %2527 = vmatmul.mubr.bf16.gmra.mrb[84].mxu1 %v2297_v40  ;;  %v2247_v19 = vmax.f32 %v3099_v53, 0.0  ;;  %v3122_v9 = vadd.f32 %v4051_v59, %v4086_v24 }
 0x240   :  { %v3105_v26 = vadd.f32 %v2130_v18, %v1552_v3  ;;  %v2248_v29 = vmax.f32 %v3101_v21, 0.0 }
 0x241   :  { %v2249_v14 = vmax.f32 %v3103_v35, 0.0  ;;  %v3124_v35 = vadd.f32 %v4053_v60, %v4088_v44 }
 0x242   :  { %v2250_v56 = vmax.f32 %v3105_v26, 0.0  ;;  %v3126_v26 = vadd.f32 %v4055_v45, %v4086_v24 }
 0x243   :  { %v2299_v30 = vpack.c.bf16 %v2249_v14, %v2247_v19 }
 0x244   :  { %v2300_v23 = vpack.c.bf16 %v2250_v56, %v2248_v29  ;;  %v2134_v48 = vpop.f32.mrb[28].mxu0  ;;  %v3128_v29 = vadd.f32 %v4057_v61, %v4088_v44 }
 0x245   :  { %v3107_v36 = vadd.f32 %v2134_v48, %v1556_v4  ;;  %v2136_v17 = vpop.f32.mrb[29].mxu0 }
 0x246   :  { %v3109_v28 = vadd.f32 %v2136_v17, %v1558_v16  ;;  %v2138_v10 = vpop.f32.mrb[30].mxu0  ;;  %2534 = vmatprep.mubr.bf16.mxu1 %v2300_v23  ;;  %v3132_v17 = vadd.f32 %v4061_v54, %v4088_v44 }
 0x247   :  { %v3111_v8 = vadd.f32 %v2138_v10, %v1560_v51  ;;  %v2140_v11 = vpop.f32.mrb[31].mxu0  ;;  %2535 = vmatmul.mubr.bf16.gmra.mrb[88].mxu1 %v2299_v30  ;;  %v2251_v5 = vmax.f32 %v3107_v36, 0.0  ;;  %v3130_v36 = vadd.f32 %v4059_v46, %v4086_v24 }
 0x248   :  { %v3113_v52 = vadd.f32 %v2140_v11, %v1562_v20  ;;  %v2252_v33 = vmax.f32 %v3109_v28, 0.0  ;;  %v3134_v28 = vadd.f32 %v4063_v49, %v4086_v24  ;;  %v3136_v11 = vadd.f32 %v4065_v0, %v4088_v44 }
 0x249   :  { %v2253_v2 = vmax.f32 %v3111_v8, 0.0 }
 0x24a   :  { %v2254_v39 = vmax.f32 %v3113_v52, 0.0 }
 0x24b   :  { %v2301_v34 = vpack.c.bf16 %v2253_v2, %v2251_v5 }
 0x24c   :  { %v2302_v22 = vpack.c.bf16 %v2254_v39, %v2252_v33  ;;  %v2144_v55 = vpop.f32.mrb[32].mxu0 }
 0x24d   :  { %v3115_v12 = vadd.f32 %v3114_v31, %v2144_v55  ;;  %v2146_v40 = vpop.f32.mrb[33].mxu0 }
 0x24e   :  { %v3117_v32 = vadd.f32 %v3116_v37, %v2146_v40  ;;  %v2148_v43 = vpop.f32.mrb[34].mxu0  ;;  %2542 = vmatprep.mubr.bf16.mxu1 %v2302_v22  ;;  %v3138_v37 = vadd.f32 %v4067_v50, %v4086_v24  ;;  %v3140_v22 = vadd.f32 %v4069_v62, %v4088_v44 }
 0x24f   :  { %v3119_v6 = vadd.f32 %v3118_v25, %v2148_v43  ;;  %v2150_v53 = vpop.f32.mrb[35].mxu0  ;;  %2543 = vmatmul.mubr.bf16.gmra.mrb[92].mxu1 %v2301_v34  ;;  %v2255_v27 = vmax.f32 %v3115_v12, 0.0  ;;  %v4312_v25 = vld [vmem:[#allocation12_spill] sm:$0xff] }
 0x250   :  { %v3121_v38 = vadd.f32 %v3120_v47, %v2150_v53  ;;  %v2256_v41 = vmax.f32 %v3117_v32, 0.0  ;;  %v3142_v12 = vadd.f32 %v4312_v25, %v4086_v24  ;;  %v4313_v32 = vld [vmem:[#allocation13_spill] sm:$0xff] }
 0x251   :  { %v2257_v3 = vmax.f32 %v3119_v6, 0.0  ;;  %v3144_v43 = vadd.f32 %v4313_v32, %v4088_v44 }
 0x252   :  { %v2258_v21 = vmax.f32 %v3121_v38, 0.0 }
 0x253   :  { %v2303_v42 = vpack.c.bf16 %v2257_v3, %v2255_v27 }
 0x254   :  { %v2304_v18 = vpack.c.bf16 %v2258_v21, %v2256_v41  ;;  %v2154_v58 = vpop.f32.mrb[36].mxu0 }
 0x255   :  { %v3123_v19 = vadd.f32 %v3122_v9, %v2154_v58  ;;  %v2156_v14 = vpop.f32.mrb[37].mxu0  ;;  %v4314_v9 = vld [vmem:[#allocation14_spill] sm:$0xff] }
 0x256   :  { %v3125_v56 = vadd.f32 %v3124_v35, %v2156_v14  ;;  %v2158_v4 = vpop.f32.mrb[38].mxu0  ;;  %2550 = vmatprep.mubr.bf16.mxu1 %v2304_v18  ;;  %v4315_v18 = vld [vmem:[#allocation15_spill] sm:$0xff]  ;;  %v4316_v14 = vld [vmem:[#allocation16_spill] sm:$0xff] }
 0x257   :  { %v3127_v30 = vadd.f32 %v3126_v26, %v2158_v4  ;;  %v2160_v16 = vpop.f32.mrb[39].mxu0  ;;  %2551 = vmatmul.mubr.bf16.gmra.mrb[96].mxu1 %v2303_v42  ;;  %v2259_v23 = vmax.f32 %v3123_v19, 0.0  ;;  %v3146_v42 = vadd.f32 %v4314_v9, %v4086_v24  ;;  %v3148_v58 = vadd.f32 %v4315_v18, %v4088_v44 }
 0x258   :  { %v3129_v59 = vadd.f32 %v3128_v29, %v2160_v16  ;;  %v2260_v60 = vmax.f32 %v3125_v56, 0.0  ;;  %v3150_v29 = vadd.f32 %v4316_v14, %v4086_v24 }
 0x259   :  { %v2261_v48 = vmax.f32 %v3127_v30, 0.0  ;;  %v4317_v30 = vld [vmem:[#allocation17_spill] sm:$0xff] }
 0x25a   :  { %v2262_v51 = vmax.f32 %v3129_v59, 0.0  ;;  %v3152_v16 = vadd.f32 %v4317_v30, %v4088_v44  ;;  %v3174_v30 = vadd.f32 %v4128_v7, %v4086_v24 }
 0x25b   :  { %v2305_v45 = vpack.c.bf16 %v2261_v48, %v2259_v23 }
 0x25c   :  { %v2306_v20 = vpack.c.bf16 %v2262_v51, %v2260_v60  ;;  %v2164_v61 = vpop.f32.mrb[40].mxu0 }
 0x25d   :  { %v3131_v10 = vadd.f32 %v3130_v36, %v2164_v61  ;;  %v2166_v8 = vpop.f32.mrb[41].mxu0  ;;  %v4318_v61 = vld [vmem:[#allocation18_spill] sm:$0xff] }
 0x25e   :  { %v3133_v52 = vadd.f32 %v3132_v17, %v2166_v8  ;;  %v2168_v5 = vpop.f32.mrb[42].mxu0  ;;  %2558 = vmatprep.mubr.bf16.mxu1 %v2306_v20  ;;  %v4319_v8 = vld [vmem:[#allocation19_spill] sm:$0xff] }
 0x25f   :  { %v3135_v2 = vadd.f32 %v3134_v28, %v2168_v5  ;;  %v2170_v33 = vpop.f32.mrb[43].mxu0  ;;  %2559 = vmatmul.mubr.bf16.gmra.mrb[100].mxu1 %v2305_v45  ;;  %v2263_v39 = vmax.f32 %v3131_v10, 0.0  ;;  %v3154_v28 = vadd.f32 %v4318_v61, %v4086_v24 }
 0x260   :  { %v3137_v46 = vadd.f32 %v3136_v11, %v2170_v33  ;;  %v2264_v54 = vmax.f32 %v3133_v52, 0.0  ;;  %v3156_v11 = vadd.f32 %v4319_v8, %v4088_v44 }
 0x261   :  { %v2265_v31 = vmax.f32 %v3135_v2, 0.0  ;;  %v4320_v2 = vld [vmem:[#allocation20_spill] sm:$0xff] }
 0x262   :  { %v2266_v34 = vmax.f32 %v3137_v46, 0.0  ;;  %v3158_v33 = vadd.f32 %v4320_v2, %v4086_v24 }
 0x263   :  { %v2307_v49 = vpack.c.bf16 %v2265_v31, %v2263_v39  ;;  %v4321_v31 = vld [vmem:[#allocation21_spill] sm:$0xff] }
 0x264   :  { %v2308_v55 = vpack.c.bf16 %v2266_v34, %v2264_v54  ;;  %v2174_v0 = vpop.f32.mrb[44].mxu0  ;;  %v3160_v54 = vadd.f32 %v4321_v31, %v4088_v44 }
 0x265   :  { %v3139_v40 = vadd.f32 %v3138_v37, %v2174_v0  ;;  %v2176_v47 = vpop.f32.mrb[45].mxu0 }
 0x266   :  { %v3141_v6 = vadd.f32 %v3140_v22, %v2176_v47  ;;  %v2178_v53 = vpop.f32.mrb[46].mxu0  ;;  %2566 = vmatprep.mubr.bf16.mxu1 %v2308_v55  ;;  %v3162_v47 = vadd.f32 %v4106_v13, %v4086_v24 }
 0x267   :  { %v3143_v38 = vadd.f32 %v3142_v12, %v2178_v53  ;;  %v2180_v27 = vpop.f32.mrb[47].mxu0  ;;  %2567 = vmatmul.mubr.bf16.gmra.mrb[104].mxu1 %v2307_v49  ;;  %v2267_v3 = vmax.f32 %v3139_v40, 0.0 }
 0x268   :  { %v3145_v50 = vadd.f32 %v3144_v43, %v2180_v27  ;;  %v2268_v62 = vmax.f32 %v3141_v6, 0.0  ;;  %v3164_v43 = vadd.f32 %v4108_v1, %v4088_v44 }
 0x269   :  { %v2269_v41 = vmax.f32 %v3143_v38, 0.0  ;;  %v4322_v38 = vld [vmem:[#allocation22_spill] sm:$0xff] }
 0x26a   :  { %v2270_v21 = vmax.f32 %v3145_v50, 0.0  ;;  %v3166_v27 = vadd.f32 %v4322_v38, %v4086_v24 }
 0x26b   :  { %v2309_v35 = vpack.c.bf16 %v2269_v41, %v2267_v3  ;;  %v4323_v41 = vld [vmem:[#allocation23_spill] sm:$0xff] }
 0x26c   :  { %v2310_v26 = vpack.c.bf16 %v2270_v21, %v2268_v62  ;;  %v2184_v19 = vpop.f32.mrb[48].mxu0  ;;  %v3168_v62 = vadd.f32 %v4323_v41, %v4088_v44 }
 0x26d   :  { %v3147_v56 = vadd.f32 %v3146_v42, %v2184_v19  ;;  %v2186_v4 = vpop.f32.mrb[49].mxu0  ;;  %v3170_v19 = vadd.f32 %v4122_v15, %v4086_v24 }
 0x26e   :  { %v3149_v59 = vadd.f32 %v3148_v58, %v2186_v4  ;;  %v2188_v23 = vpop.f32.mrb[50].mxu0  ;;  %2574 = vmatprep.mubr.bf16.mxu1 %v2310_v26 }
 0x26f   :  { %v3151_v48 = vadd.f32 %v3150_v29, %v2188_v23  ;;  %v2190_v60 = vpop.f32.mrb[51].mxu0  ;;  %2575 = vmatmul.mubr.bf16.gmra.mrb[108].mxu1 %v2309_v35  ;;  %v2271_v36 = vmax.f32 %v3147_v56, 0.0  ;;  %v3172_v29 = vadd.f32 %v4124_v63, %v4088_v44  ;;  %v3176_v23 = vadd.f32 %v4132_v57, %v4088_v44  ;;  %v4245_v44 = vld [vmem:[%s4298_s4] ss:$0 sm:$0xff]  ;;  %s3765_s4 = smov [#allocation8]  }
 0x270   :  { %v3153_v51 = vadd.f32 %v3152_v16, %v2190_v60  ;;  %v2272_v17 = vmax.f32 %v3149_v59, 0.0  ;;  %s2652_s12 = sshll.u32 %s3765_s4, 4  ;;  %s2653_s12 = int_to_ptr.vmem [resolvable:$true] %s2652_s12 }
 0x271   :  { %v2273_v45 = vmax.f32 %v3151_v48, 0.0  ;;  %s3727_s13 = scalar_lea.vmem %s2653_s12, 4096  ;;  %p3732_p11 = scmp.lt.s32.totalorder %s2653_s12, %s2653_s12 }
 0x272   :  { %v2274_v20 = vmax.f32 %v3153_v51, 0.0  ;;  %p3728_p10 = scmp.ne.s32.totalorder %s2653_s12, %s3727_s13  ;;  %p3733_p12 = scmp.lt.s32.totalorder %s3727_s13, %s3727_s13 }
 0x273   :  { %v2311_v10 = vpack.c.bf16 %v2273_v45, %v2271_v36 }
 0x274   :  { %v2312_v52 = vpack.c.bf16 %v2274_v20, %v2272_v17  ;;  %v2194_v5 = vpop.f32.mrb[52].mxu0  ;;  %p3734_p13 = por %p3733_p12, %p3732_p11 }
 0x275   :  { %v3155_v46 = vadd.f32 %v3154_v28, %v2194_v5  ;;  %v2196_v39 = vpop.f32.mrb[53].mxu0 }
 0x276   :  { %v3157_v34 = vadd.f32 %v3156_v11, %v2196_v39  ;;  %v2198_v37 = vpop.f32.mrb[54].mxu0  ;;  %2582 = vmatprep.mubr.bf16.mxu1 %v2312_v52  ;;  %p3735_p0 = pnand %p3734_p13, %p3728_p10 }
 0x277   :  { %v3159_v49 = vadd.f32 %v3158_v33, %v2198_v37  ;;  %v2200_v22 = vpop.f32.mrb[55].mxu0  ;;  %2583 = vmatmul.mubr.bf16.gmra.mrb[112].mxu1 %v2311_v10  ;;  %v2275_v0 = vmax.f32 %v3155_v46, 0.0 }
 0x278   :  { %v3161_v55 = vadd.f32 %v3160_v54, %v2200_v22  ;;  %v2276_v12 = vmax.f32 %v3157_v34, 0.0 }
 0x279   :  { %v2277_v25 = vmax.f32 %v3159_v49, 0.0 }
 0x27a   :  { %v2278_v40 = vmax.f32 %v3161_v55, 0.0 }
 0x27b   :  { %v2313_v32 = vpack.c.bf16 %v2277_v25, %v2275_v0 }
 0x27c   :  { %v2314_v6 = vpack.c.bf16 %v2278_v40, %v2276_v12  ;;  %v2204_v53 = vpop.f32.mrb[56].mxu0 }
 0x27d   :  { %v3163_v50 = vadd.f32 %v3162_v47, %v2204_v53  ;;  %v2206_v3 = vpop.f32.mrb[57].mxu0 }
 0x27e   :  { %v3165_v21 = vadd.f32 %v3164_v43, %v2206_v3  ;;  %v2208_v9 = vpop.f32.mrb[58].mxu0  ;;  %2590 = vmatprep.mubr.bf16.mxu1 %v2314_v6 }
 0x27f   :  { %v3167_v42 = vadd.f32 %v3166_v27, %v2208_v9  ;;  %v2210_v35 = vpop.f32.mrb[59].mxu0  ;;  %2591 = vmatmul.mubr.bf16.gmra.mrb[116].mxu1 %v2313_v32  ;;  %v2279_v18 = vmax.f32 %v3163_v50, 0.0 }
 0x280   :  { %v3169_v13 = vadd.f32 %v3168_v62, %v2210_v35  ;;  %v2280_v1 = vmax.f32 %v3165_v21, 0.0 }
 0x281   :  { %v2281_v58 = vmax.f32 %v3167_v42, 0.0 }
 0x282   :  { %v2282_v26 = vmax.f32 %v3169_v13, 0.0 }
 0x283   :  { %v2315_v14 = vpack.c.bf16 %v2281_v58, %v2279_v18 }
 0x284   :  { %v2316_v56 = vpack.c.bf16 %v2282_v26, %v2280_v1  ;;  %v2214_v4 = vpop.f32.mrb[60].mxu0 }
 0x285   :  { %v3171_v16 = vadd.f32 %v3170_v19, %v2214_v4  ;;  %v2216_v59 = vpop.f32.mrb[61].mxu0 }
 0x286   :  { %v3173_v48 = vadd.f32 %v3172_v29, %v2216_v59  ;;  %v2218_v60 = vpop.f32.mrb[62].mxu0  ;;  %2598 = vmatprep.mubr.bf16.mxu1 %v2316_v56 }
 0x287   :  { %v3175_v51 = vadd.f32 %v3174_v30, %v2218_v60  ;;  %v2220_v36 = vpop.f32.mrb[63].mxu0  ;;  %2599 = vmatmul.mubr.bf16.gmra.mrb[120].mxu1 %v2315_v14  ;;  %v2283_v45 = vmax.f32 %v3171_v16, 0.0 }
 0x288   :  { %v3177_v15 = vadd.f32 %v3176_v23, %v2220_v36  ;;  %v2284_v63 = vmax.f32 %v3173_v48, 0.0 }
 0x289   :  { %v2285_v17 = vmax.f32 %v3175_v51, 0.0 }
 0x28a   :  { %v2286_v20 = vmax.f32 %v3177_v15, 0.0 }
 0x28b   :  { %v2317_v61 = vpack.c.bf16 %v2285_v17, %v2283_v45 }
 0x28c   :  { %v2318_v28 = vpack.c.bf16 %v2286_v20, %v2284_v63 }
 0x28e   :  { %2606 = vmatprep.mubr.bf16.mxu1 %v2318_v28 }
 0x28f   :  { %2607 = vmatmul.mubr.bf16.gmra.mrb[124].mxu1 %v2317_v61 }
 0x2ea   :  { %v2922_v24 = vpop.f32.mrb[64].mxu1 }
 0x2eb   :  { %v2923_v7 = vpop.f32.mrb[65].mxu1 }
 0x2ec   :  { %v2924_v57 = vadd.f32 %v2923_v7, %v2922_v24  ;;  %v2925_v10 = vpop.f32.mrb[66].mxu1 }
 0x2ed   :  { %v2926_v8 = vpop.f32.mrb[67].mxu1 }
 0x2ee   :  { %v2489_v11 = vadd.f32 %v2924_v57, %v4245_v44  ;;  %v2927_v52 = vadd.f32 %v2926_v8, %v2925_v10 }
 0x2f0   :  { %2615 = vst [vmem:[#allocation8] sm:$0xff] %v2489_v11  ;;  %v2492_v5 = vadd.f32 %v2927_v52, %v4245_v44 }
 0x2f2   :  { %2616 = vst [vmem:[#allocation8 + $0x8] sm:$0xff] %v2492_v5  ;;  %v2928_v2 = vpop.f32.mrb[68].mxu1 }
 0x2f3   :  { %v2929_v33 = vpop.f32.mrb[69].mxu1 }
 0x2f4   :  { %v2930_v46 = vadd.f32 %v2929_v33, %v2928_v2  ;;  %v2931_v39 = vpop.f32.mrb[70].mxu1 }
 0x2f5   :  { %v2932_v31 = vpop.f32.mrb[71].mxu1 }
 0x2f6   :  { %v2497_v54 = vadd.f32 %v2930_v46, %v4245_v44  ;;  %v2933_v34 = vadd.f32 %v2932_v31, %v2931_v39 }
 0x2f8   :  { %2617 = vst [vmem:[#allocation8 + $0x10] sm:$0xff] %v2497_v54  ;;  %v2500_v37 = vadd.f32 %v2933_v34, %v4245_v44 }
 0x2fa   :  { %2618 = vst [vmem:[#allocation8 + $0x18] sm:$0xff] %v2500_v37  ;;  %v2934_v49 = vpop.f32.mrb[72].mxu1 }
 0x2fb   :  { %v2935_v22 = vpop.f32.mrb[73].mxu1 }
 0x2fc   :  { %v2936_v55 = vadd.f32 %v2935_v22, %v2934_v49  ;;  %v2937_v0 = vpop.f32.mrb[74].mxu1 }
 0x2fd   :  { %v2938_v25 = vpop.f32.mrb[75].mxu1 }
 0x2fe   :  { %v2505_v12 = vadd.f32 %v2936_v55, %v4245_v44  ;;  %v2939_v40 = vadd.f32 %v2938_v25, %v2937_v0 }
 0x300   :  { %2619 = vst [vmem:[#allocation8 + $0x20] sm:$0xff] %v2505_v12  ;;  %v2508_v47 = vadd.f32 %v2939_v40, %v4245_v44 }
 0x302   :  { %2620 = vst [vmem:[#allocation8 + $0x28] sm:$0xff] %v2508_v47  ;;  %v2940_v32 = vpop.f32.mrb[76].mxu1 }
 0x303   :  { %v2941_v43 = vpop.f32.mrb[77].mxu1 }
 0x304   :  { %v2942_v6 = vadd.f32 %v2941_v43, %v2940_v32  ;;  %v2943_v53 = vpop.f32.mrb[78].mxu1 }
 0x305   :  { %v2944_v38 = vpop.f32.mrb[79].mxu1 }
 0x306   :  { %v2513_v27 = vadd.f32 %v2942_v6, %v4245_v44  ;;  %v2945_v50 = vadd.f32 %v2944_v38, %v2943_v53 }
 0x308   :  { %2621 = vst [vmem:[#allocation8 + $0x30] sm:$0xff] %v2513_v27  ;;  %v2516_v3 = vadd.f32 %v2945_v50, %v4245_v44 }
 0x30a   :  { %2622 = vst [vmem:[#allocation8 + $0x38] sm:$0xff] %v2516_v3  ;;  %v2946_v41 = vpop.f32.mrb[80].mxu1 }
 0x30b   :  { %v2947_v62 = vpop.f32.mrb[81].mxu1 }
 0x30c   :  { %v2948_v21 = vadd.f32 %v2947_v62, %v2946_v41  ;;  %v2949_v9 = vpop.f32.mrb[82].mxu1 }
 0x30d   :  { %v2950_v42 = vpop.f32.mrb[83].mxu1 }
 0x30e   :  { %v2521_v35 = vadd.f32 %v2948_v21, %v4245_v44  ;;  %v2951_v13 = vadd.f32 %v2950_v42, %v2949_v9 }
 0x310   :  { %2623 = vst [vmem:[#allocation8 + $0x40] sm:$0xff] %v2521_v35  ;;  %v2524_v18 = vadd.f32 %v2951_v13, %v4245_v44 }
 0x312   :  { %2624 = vst [vmem:[#allocation8 + $0x48] sm:$0xff] %v2524_v18  ;;  %v2952_v58 = vpop.f32.mrb[84].mxu1 }
 0x313   :  { %v2953_v1 = vpop.f32.mrb[85].mxu1 }
 0x314   :  { %v2954_v26 = vadd.f32 %v2953_v1, %v2952_v58  ;;  %v2955_v19 = vpop.f32.mrb[86].mxu1 }
 0x315   :  { %v2956_v14 = vpop.f32.mrb[87].mxu1 }
 0x316   :  { %v2529_v29 = vadd.f32 %v2954_v26, %v4245_v44  ;;  %v2957_v56 = vadd.f32 %v2956_v14, %v2955_v19 }
 0x318   :  { %2625 = vst [vmem:[#allocation8 + $0x50] sm:$0xff] %v2529_v29  ;;  %v2532_v4 = vadd.f32 %v2957_v56, %v4245_v44 }
 0x31a   :  { %2626 = vst [vmem:[#allocation8 + $0x58] sm:$0xff] %v2532_v4  ;;  %v2958_v30 = vpop.f32.mrb[88].mxu1 }
 0x31b   :  { %v2959_v16 = vpop.f32.mrb[89].mxu1 }
 0x31c   :  { %v2960_v59 = vadd.f32 %v2959_v16, %v2958_v30  ;;  %v2961_v23 = vpop.f32.mrb[90].mxu1 }
 0x31d   :  { %v2962_v48 = vpop.f32.mrb[91].mxu1 }
 0x31e   :  { %v2537_v60 = vadd.f32 %v2960_v59, %v4245_v44  ;;  %v2963_v51 = vadd.f32 %v2962_v48, %v2961_v23 }
 0x320   :  { %2627 = vst [vmem:[#allocation8 + $0x60] sm:$0xff] %v2537_v60  ;;  %v2540_v36 = vadd.f32 %v2963_v51, %v4245_v44 }
 0x322   :  { %2628 = vst [vmem:[#allocation8 + $0x68] sm:$0xff] %v2540_v36  ;;  %v2964_v15 = vpop.f32.mrb[92].mxu1 }
 0x323   :  { %v2965_v45 = vpop.f32.mrb[93].mxu1 }
 0x324   :  { %v2966_v17 = vadd.f32 %v2965_v45, %v2964_v15  ;;  %v2967_v63 = vpop.f32.mrb[94].mxu1 }
 0x325   :  { %v2968_v20 = vpop.f32.mrb[95].mxu1 }
 0x326   :  { %v2545_v61 = vadd.f32 %v2966_v17, %v4245_v44  ;;  %v2969_v28 = vadd.f32 %v2968_v20, %v2967_v63 }
 0x328   :  { %2629 = vst [vmem:[#allocation8 + $0x70] sm:$0xff] %v2545_v61  ;;  %v2548_v24 = vadd.f32 %v2969_v28, %v4245_v44 }
 0x32a   :  { %2630 = vst [vmem:[#allocation8 + $0x78] sm:$0xff] %v2548_v24  ;;  %v2970_v7 = vpop.f32.mrb[96].mxu1 }
 0x32b   :  { %v2971_v57 = vpop.f32.mrb[97].mxu1 }
 0x32c   :  { %v2972_v10 = vadd.f32 %v2971_v57, %v2970_v7  ;;  %v2973_v8 = vpop.f32.mrb[98].mxu1 }
 0x32d   :  { %v2974_v11 = vpop.f32.mrb[99].mxu1 }
 0x32e   :  { %v2553_v52 = vadd.f32 %v2972_v10, %v4245_v44  ;;  %v2975_v5 = vadd.f32 %v2974_v11, %v2973_v8 }
 0x330   :  { %2631 = vst [vmem:[#allocation8 + $0x80] sm:$0xff] %v2553_v52  ;;  %v2556_v2 = vadd.f32 %v2975_v5, %v4245_v44 }
 0x332   :  { %2632 = vst [vmem:[#allocation8 + $0x88] sm:$0xff] %v2556_v2  ;;  %v2976_v33 = vpop.f32.mrb[100].mxu1 }
 0x333   :  { %v2977_v46 = vpop.f32.mrb[101].mxu1 }
 0x334   :  { %v2978_v39 = vadd.f32 %v2977_v46, %v2976_v33  ;;  %v2979_v31 = vpop.f32.mrb[102].mxu1 }
 0x335   :  { %v2980_v54 = vpop.f32.mrb[103].mxu1 }
 0x336   :  { %v2561_v34 = vadd.f32 %v2978_v39, %v4245_v44  ;;  %v2981_v37 = vadd.f32 %v2980_v54, %v2979_v31 }
 0x338   :  { %2633 = vst [vmem:[#allocation8 + $0x90] sm:$0xff] %v2561_v34  ;;  %v2564_v49 = vadd.f32 %v2981_v37, %v4245_v44 }
 0x33a   :  { %2634 = vst [vmem:[#allocation8 + $0x98] sm:$0xff] %v2564_v49  ;;  %v2982_v22 = vpop.f32.mrb[104].mxu1 }
 0x33b   :  { %v2983_v55 = vpop.f32.mrb[105].mxu1 }
 0x33c   :  { %v2984_v0 = vadd.f32 %v2983_v55, %v2982_v22  ;;  %v2985_v25 = vpop.f32.mrb[106].mxu1 }
 0x33d   :  { %v2986_v12 = vpop.f32.mrb[107].mxu1 }
 0x33e   :  { %v2569_v40 = vadd.f32 %v2984_v0, %v4245_v44  ;;  %v2987_v47 = vadd.f32 %v2986_v12, %v2985_v25 }
 0x340   :  { %2635 = vst [vmem:[#allocation8 + $0xa0] sm:$0xff] %v2569_v40  ;;  %v2572_v32 = vadd.f32 %v2987_v47, %v4245_v44 }
 0x342   :  { %2636 = vst [vmem:[#allocation8 + $0xa8] sm:$0xff] %v2572_v32  ;;  %v2988_v43 = vpop.f32.mrb[108].mxu1 }
 0x343   :  { %v2989_v6 = vpop.f32.mrb[109].mxu1 }
 0x344   :  { %v2990_v53 = vadd.f32 %v2989_v6, %v2988_v43  ;;  %v2991_v38 = vpop.f32.mrb[110].mxu1 }
 0x345   :  { %v2992_v27 = vpop.f32.mrb[111].mxu1 }
 0x346   :  { %v2577_v50 = vadd.f32 %v2990_v53, %v4245_v44  ;;  %v2993_v3 = vadd.f32 %v2992_v27, %v2991_v38 }
 0x348   :  { %2637 = vst [vmem:[#allocation8 + $0xb0] sm:$0xff] %v2577_v50  ;;  %v2580_v41 = vadd.f32 %v2993_v3, %v4245_v44 }
 0x34a   :  { %2638 = vst [vmem:[#allocation8 + $0xb8] sm:$0xff] %v2580_v41  ;;  %v2994_v62 = vpop.f32.mrb[112].mxu1 }
 0x34b   :  { %v2995_v21 = vpop.f32.mrb[113].mxu1 }
 0x34c   :  { %v2996_v9 = vadd.f32 %v2995_v21, %v2994_v62  ;;  %v2997_v42 = vpop.f32.mrb[114].mxu1 }
 0x34d   :  { %v2998_v35 = vpop.f32.mrb[115].mxu1 }
 0x34e   :  { %v2585_v13 = vadd.f32 %v2996_v9, %v4245_v44  ;;  %v2999_v18 = vadd.f32 %v2998_v35, %v2997_v42 }
 0x350   :  { %2639 = vst [vmem:[#allocation8 + $0xc0] sm:$0xff] %v2585_v13  ;;  %v2588_v58 = vadd.f32 %v2999_v18, %v4245_v44 }
 0x352   :  { %2640 = vst [vmem:[#allocation8 + $0xc8] sm:$0xff] %v2588_v58  ;;  %v3000_v1 = vpop.f32.mrb[116].mxu1 }
 0x353   :  { %v3001_v26 = vpop.f32.mrb[117].mxu1 }
 0x354   :  { %v3002_v19 = vadd.f32 %v3001_v26, %v3000_v1  ;;  %v3003_v14 = vpop.f32.mrb[118].mxu1 }
 0x355   :  { %v3004_v29 = vpop.f32.mrb[119].mxu1 }
 0x356   :  { %v2593_v56 = vadd.f32 %v3002_v19, %v4245_v44  ;;  %v3005_v4 = vadd.f32 %v3004_v29, %v3003_v14 }
 0x358   :  { %2641 = vst [vmem:[#allocation8 + $0xd0] sm:$0xff] %v2593_v56  ;;  %v2596_v30 = vadd.f32 %v3005_v4, %v4245_v44 }
 0x35a   :  { %2642 = vst [vmem:[#allocation8 + $0xd8] sm:$0xff] %v2596_v30  ;;  %v3006_v16 = vpop.f32.mrb[120].mxu1 }
 0x35b   :  { %v3007_v59 = vpop.f32.mrb[121].mxu1 }
 0x35c   :  { %v3008_v23 = vadd.f32 %v3007_v59, %v3006_v16  ;;  %v3009_v48 = vpop.f32.mrb[122].mxu1 }
 0x35d   :  { %v3010_v60 = vpop.f32.mrb[123].mxu1 }
 0x35e   :  { %v2601_v51 = vadd.f32 %v3008_v23, %v4245_v44  ;;  %v3011_v36 = vadd.f32 %v3010_v60, %v3009_v48 }
 0x360   :  { %2643 = vst [vmem:[#allocation8 + $0xe0] sm:$0xff] %v2601_v51  ;;  %v2604_v15 = vadd.f32 %v3011_v36, %v4245_v44 }
 0x362   :  { %2644 = vst [vmem:[#allocation8 + $0xe8] sm:$0xff] %v2604_v15  ;;  %v3012_v45 = vpop.f32.mrb[124].mxu1 }
 0x363   :  { %v3013_v17 = vpop.f32.mrb[125].mxu1 }
 0x364   :  { %v3014_v63 = vadd.f32 %v3013_v17, %v3012_v45  ;;  %v3015_v20 = vpop.f32.mrb[126].mxu1 }
 0x365   :  { %v3016_v61 = vpop.f32.mrb[127].mxu1 }
 0x366   :  { %v2609_v28 = vadd.f32 %v3014_v63, %v4245_v44  ;;  %v3017_v24 = vadd.f32 %v3016_v61, %v3015_v20 }
 0x368   :  { %2645 = vst [vmem:[#allocation8 + $0xf0] sm:$0xff] %v2609_v28  ;;  %v2612_v7 = vadd.f32 %v3017_v24, %v4245_v44 }
 0x36a   :  { %2646 = vst [vmem:[#allocation8 + $0xf8] sm:$0xff] %v2612_v7 }
 0x36b   :  { %3738 = shalt.err (!%p3735_p0)
}
 0x36c   :  { %s3739_s16 = scalar_lea.hbm %s4299_s5, 4096 }
 0x36d   :  { %p3740_p1 = scmp.ne.s32.totalorder %s4299_s5, %s3739_s16  ;;  %p3743_p2 = scmp.lt.u32.totalorder %s3739_s16, %s4299_s5 }
 0x36f   :  { %p3745_p3 = pnand %p3743_p2, %p3740_p1 }
 0x371   :  { %3748 = shalt.err (!%p3745_p3)
}
 0x372   :  { %2658 = dma.vmem_to_hbm [thread:$0]  %s2653_s12, 4096, %s4299_s5, [#allocation4], %s3756_s28, %s3756_s28, %s3757_s29  }
 0x373   :  { %3753 = dma.done.wait [#allocation4], 4096  }
 0x374   :  { %3754 = vsyncadd [#allocation4], 4294963200 }
 0x375   :  { %2662 = vsyncpa [#allocation3], 1 }
 0x376   :  { %2663 = vsyncpa [#allocation6], 1 }
 0x377   :  { %2664 = vsyncpa [#allocation4], 1 }

</bundles_post_ra>
